<compile_context>
chip_gen: v7x
topology: tpu7x:2x2x1
jax: 0.10.0
libtpu: 0.0.40
codegen_flags: <defaults>
</compile_context>

<pallas_src>
import functools
import math

import jax
import jax.numpy as jnp
from jax.experimental import pallas as pl
from jax.experimental.pallas import tpu as pltpu


# ------------------------------ tiling helpers ------------------------------

TM_TARGET = 256     # M tile target (MXU-friendly, fits the v7x 64 MiB VMEM budget)
TN_TARGET = 256     # N tile target
TK_TARGET = 512     # K (reduction) tile target
TF_TARGET = 512     # d_ff tile target for the fused FFN
VMEM_LIMIT_BYTES = 32 * 1024 * 1024   # explicit scoped-VMEM budget (safe on v5e/v6e/v7x)


def _pick_tile(dim, target, align):
    """Largest block <= target that is a multiple of `align` and evenly divides `dim`;
    falls back to the full dim (always a legal block) otherwise."""
    if dim <= target:
        return dim
    best = None
    t = align
    while t <= target:
        if dim % t == 0:
            best = t
        t += align
    return best if best is not None else dim


def _cparams(dims):
    return pltpu.CompilerParams(dimension_semantics=dims,
                                vmem_limit_bytes=VMEM_LIMIT_BYTES)


# ------------------------------ Pallas kernels ------------------------------

def _matmul_bias_kernel(x_ref, w_ref, b_ref, o_ref, acc_ref):
    """Tiled matmul with f32 accumulator; bias added in the finalize epilogue."""
    @pl.when(pl.program_id(2) == 0)
    def _():
        acc_ref[...] = jnp.zeros_like(acc_ref)

    acc_ref[...] += jnp.dot(x_ref[...], w_ref[...],
                            preferred_element_type=jnp.float32)

    @pl.when(pl.program_id(2) == pl.num_programs(2) - 1)
    def _():
        y = acc_ref[...] + b_ref[...].astype(jnp.float32)
        o_ref[...] = y.astype(o_ref.dtype)


def matmul_bias(x, w, b):
    """x: (M, K) @ w: (K, N) + b: (1, N) -> (M, N), tiled with K-axis accumulation."""
    M, K = x.shape
    N = w.shape[1]
    tm = _pick_tile(M, TM_TARGET, 8)
    tn = _pick_tile(N, TN_TARGET, 128)
    tk = _pick_tile(K, TK_TARGET, 128)
    return pl.pallas_call(
        _matmul_bias_kernel,
        out_shape=jax.ShapeDtypeStruct((M, N), x.dtype),
        grid=(M // tm, N // tn, K // tk),
        in_specs=[
            pl.BlockSpec((tm, tk), lambda i, j, k: (i, k)),
            pl.BlockSpec((tk, tn), lambda i, j, k: (k, j)),
            pl.BlockSpec((1, tn), lambda i, j, k: (0, j)),
        ],
        out_specs=pl.BlockSpec((tm, tn), lambda i, j, k: (i, j)),
        scratch_shapes=[pltpu.VMEM((tm, tn), jnp.float32)],
        compiler_params=_cparams(("parallel", "parallel", "arbitrary")),
    )(x, w, b)


def _matmul_residual_ln_kernel(x_ref, w_ref, b_ref, r_ref, g_ref, bt_ref,
                               o_ref, acc_ref, *, eps):
    """Output projection fused with Add&LayerNorm: LN(x @ w + b + residual) * g + bt."""
    k = pl.program_id(1)

    @pl.when(k == 0)
    def _():
        acc_ref[...] = jnp.zeros_like(acc_ref)

    acc_ref[...] += jnp.dot(x_ref[...], w_ref[...],
                            preferred_element_type=jnp.float32)

    @pl.when(k == pl.num_programs(1) - 1)
    def _():
        y = (acc_ref[...] + b_ref[...].astype(jnp.float32)
             + r_ref[...].astype(jnp.float32))
        mean = jnp.mean(y, axis=-1, keepdims=True)
        var = jnp.mean(jnp.square(y - mean), axis=-1, keepdims=True)
        yn = (y - mean) * jax.lax.rsqrt(var + eps)
        o_ref[...] = (yn * g_ref[...].astype(jnp.float32)
                      + bt_ref[...].astype(jnp.float32)).astype(o_ref.dtype)


def matmul_residual_ln(x, w, b, residual, gamma, beta, eps=1e-5):
    """LayerNorm((x @ w + b) + residual). N (= d_model) kept whole so LN rides the epilogue."""
    M, K = x.shape
    N = w.shape[1]
    tm = _pick_tile(M, TM_TARGET, 8)
    tk = _pick_tile(K, TK_TARGET, 128)
    return pl.pallas_call(
        functools.partial(_matmul_residual_ln_kernel, eps=eps),
        out_shape=jax.ShapeDtypeStruct((M, N), x.dtype),
        grid=(M // tm, K // tk),
        in_specs=[
            pl.BlockSpec((tm, tk), lambda i, k: (i, k)),
            pl.BlockSpec((tk, N), lambda i, k: (k, 0)),
            pl.BlockSpec((1, N), lambda i, k: (0, 0)),
            pl.BlockSpec((tm, N), lambda i, k: (i, 0)),
            pl.BlockSpec((1, N), lambda i, k: (0, 0)),
            pl.BlockSpec((1, N), lambda i, k: (0, 0)),
        ],
        out_specs=pl.BlockSpec((tm, N), lambda i, k: (i, 0)),
        scratch_shapes=[pltpu.VMEM((tm, N), jnp.float32)],
        compiler_params=_cparams(("parallel", "arbitrary")),
    )(x, w, b, residual, gamma, beta)


def _ffn_residual_ln_kernel(x_ref, w1_ref, b1_ref, w2_ref, b2_ref, g_ref, bt_ref,
                            o_ref, acc_ref, *, eps):
    """Fused FFN: LN(relu(x@w1+b1)@w2 + b2 + x), tiled over d_ff (no HBM intermediate)."""
    f = pl.program_id(1)

    @pl.when(f == 0)
    def _():
        acc_ref[...] = jnp.zeros_like(acc_ref)

    h = jnp.dot(x_ref[...], w1_ref[...], preferred_element_type=jnp.float32)
    h = jnp.maximum(h + b1_ref[...].astype(jnp.float32), 0.0)
    acc_ref[...] += jnp.dot(h.astype(x_ref.dtype), w2_ref[...],
                            preferred_element_type=jnp.float32)

    @pl.when(f == pl.num_programs(1) - 1)
    def _():
        y = (acc_ref[...] + b2_ref[...].astype(jnp.float32)
             + x_ref[...].astype(jnp.float32))       # residual = FFN input
        mean = jnp.mean(y, axis=-1, keepdims=True)
        var = jnp.mean(jnp.square(y - mean), axis=-1, keepdims=True)
        yn = (y - mean) * jax.lax.rsqrt(var + eps)
        o_ref[...] = (yn * g_ref[...].astype(jnp.float32)
                      + bt_ref[...].astype(jnp.float32)).astype(o_ref.dtype)


def ffn_residual_ln(x, w1, b1, w2, b2, gamma, beta, eps=1e-5):
    M, D = x.shape
    F = w1.shape[1]
    tm = _pick_tile(M, TM_TARGET, 8)
    tf = _pick_tile(F, TF_TARGET, 128)
    return pl.pallas_call(
        functools.partial(_ffn_residual_ln_kernel, eps=eps),
        out_shape=jax.ShapeDtypeStruct((M, D), x.dtype),
        grid=(M // tm, F // tf),
        in_specs=[
            pl.BlockSpec((tm, D), lambda i, f: (i, 0)),
            pl.BlockSpec((D, tf), lambda i, f: (0, f)),
            pl.BlockSpec((1, tf), lambda i, f: (0, f)),
            pl.BlockSpec((tf, D), lambda i, f: (f, 0)),
            pl.BlockSpec((1, D), lambda i, f: (0, 0)),
            pl.BlockSpec((1, D), lambda i, f: (0, 0)),
            pl.BlockSpec((1, D), lambda i, f: (0, 0)),
        ],
        out_specs=pl.BlockSpec((tm, D), lambda i, f: (i, 0)),
        scratch_shapes=[pltpu.VMEM((tm, D), jnp.float32)],
        compiler_params=_cparams(("parallel", "arbitrary")),
    )(x, w1, b1, w2, b2, gamma, beta)


def _mha_kernel(q_ref, k_ref, v_ref, o_ref, *, nhead, scale, causal):
    """Multi-head attention for one batch element. q/k/v blocks are (1, S, D); heads are
    split inside the kernel (static slices) so the wrapper needs no transposes."""
    q = q_ref[0]            # (Sq, D), compute dtype (e.g. bf16) straight into the MXU
    k = k_ref[0]            # (Sk, D)
    v = v_ref[0]            # (Sk, D)
    sq, d = q.shape
    sk = k.shape[0]
    dh = d // nhead

    if causal:
        row = jax.lax.broadcasted_iota(jnp.int32, (sq, sk), 0)
        col = jax.lax.broadcasted_iota(jnp.int32, (sq, sk), 1)
        keep = row >= col

    head_outs = []
    for h in range(nhead):                      # static unrolled loop over heads
        lo = h * dh
        qh = q[:, lo:lo + dh]
        kh = k[:, lo:lo + dh]
        vh = v[:, lo:lo + dh]
        # q @ k^T without an explicit transpose: contract the Dh axis of both operands.
        s = jax.lax.dot_general(qh, kh, (((1,), (1,)), ((), ())),
                                preferred_element_type=jnp.float32) * scale
        if causal:
            s = jnp.where(keep, s, -1e30)       # mask applied in f32
        m = jnp.max(s, axis=-1, keepdims=True)
        p = jnp.exp(s - m)
        denom = jnp.sum(p, axis=-1, keepdims=True)
        p = p * pl.reciprocal(denom, approx=True)
        head_outs.append(jnp.dot(p.astype(v.dtype), vh,
                                 preferred_element_type=jnp.float32))
    o = jnp.concatenate(head_outs, axis=-1)     # (Sq, D) — one lane-dense store
    o_ref[0] = o.astype(o_ref.dtype)


def multihead_attention(q, k, v, nhead, causal):
    """q: (B, Sq, D), k/v: (B, Sk, D) -> (B, Sq, D)."""
    B, Sq, D = q.shape
    Sk = k.shape[1]
    scale = 1.0 / math.sqrt(D // nhead)
    return pl.pallas_call(
        functools.partial(_mha_kernel, nhead=nhead, scale=scale, causal=causal),
        out_shape=jax.ShapeDtypeStruct((B, Sq, D), q.dtype),
        grid=(B,),
        in_specs=[
            pl.BlockSpec((1, Sq, D), lambda b: (b, 0, 0)),
            pl.BlockSpec((1, Sk, D), lambda b: (b, 0, 0)),
            pl.BlockSpec((1, Sk, D), lambda b: (b, 0, 0)),
        ],
        out_specs=pl.BlockSpec((1, Sq, D), lambda b: (b, 0, 0)),
        compiler_params=_cparams(("parallel",)),
    )(q, k, v)


# ---------------------------- Decoder composition ----------------------------

def decoder_layer_forward(x, memory, p, nhead, causal):
    B, S, D = x.shape
    Sm = memory.shape[1]
    x2 = x.reshape(B * S, D)
    m2 = memory.reshape(B * Sm, D)

    # --- self-attention (fused QKV projection) + Add&LayerNorm (fused into out-proj) ---
    sa = p["self_attn"]
    qkv = matmul_bias(x2, sa["w_qkv"], sa["b_qkv"])            # (B*S, 3D)
    q = qkv[:, :D].reshape(B, S, D)
    k = qkv[:, D:2 * D].reshape(B, S, D)
    v = qkv[:, 2 * D:].reshape(B, S, D)
    attn = multihead_attention(q, k, v, nhead, causal=causal)  # (B, S, D)
    x2 = matmul_residual_ln(attn.reshape(B * S, D), sa["wo"], sa["bo"],
                            x2, p["ln1_g"], p["ln1_b"])

    # --- cross-attention (no mask) + Add&LayerNorm ---
    ca = p["cross_attn"]
    q = matmul_bias(x2, ca["wq"], ca["bq"]).reshape(B, S, D)
    kv = matmul_bias(m2, ca["w_kv"], ca["b_kv"])               # (B*Sm, 2D)
    k = kv[:, :D].reshape(B, Sm, D)
    v = kv[:, D:].reshape(B, Sm, D)
    attn = multihead_attention(q, k, v, nhead, causal=False)
    x2 = matmul_residual_ln(attn.reshape(B * S, D), ca["wo"], ca["bo"],
                            x2, p["ln2_g"], p["ln2_b"])

    # --- fused FFN (w1 + ReLU + w2 + residual + LayerNorm) ---
    x2 = ffn_residual_ln(x2, p["w1"], p["b1"], p["w2"], p["b2"],
                         p["ln3_g"], p["ln3_b"])
    return x2.reshape(B, S, D)


@functools.partial(jax.jit, static_argnames=("nhead", "causal"))
def transformer_decoder_forward(tgt, memory, stacked_layer_params, nhead, causal=True):
    # Equivalent of: for mod in self.layers: output = mod(output, memory, tgt_mask=tgt_mask)
    def body(x, layer_p):
        return decoder_layer_forward(x, memory, layer_p, nhead, causal), None
    out, _ = jax.lax.scan(body, tgt, stacked_layer_params)
    return out


# ------------------------------ Parameter init ------------------------------

def init_layer_params(key, d_model, d_ff, dtype):
    ks = jax.random.split(key, 7)
    scale = 0.02

    def w(k, shape):
        return (scale * jax.random.normal(k, shape)).astype(dtype)

    def zeros(shape):
        return jnp.zeros(shape, dtype)

    return {
        "self_attn": {
            "w_qkv": w(ks[0], (d_model, 3 * d_model)), "b_qkv": zeros((1, 3 * d_model)),
            "wo": w(ks[1], (d_model, d_model)), "bo": zeros((1, d_model)),
        },
        "cross_attn": {
            "wq": w(ks[2], (d_model, d_model)), "bq": zeros((1, d_model)),
            "w_kv": w(ks[3], (d_model, 2 * d_model)), "b_kv": zeros((1, 2 * d_model)),
            "wo": w(ks[4], (d_model, d_model)), "bo": zeros((1, d_model)),
        },
        "w1": w(ks[5], (d_model, d_ff)), "b1": zeros((1, d_ff)),
        "w2": w(ks[6], (d_ff, d_model)), "b2": zeros((1, d_model)),
        "ln1_g": jnp.ones((1, d_model), dtype), "ln1_b": zeros((1, d_model)),
        "ln2_g": jnp.ones((1, d_model), dtype), "ln2_b": zeros((1, d_model)),
        "ln3_g": jnp.ones((1, d_model), dtype), "ln3_b": zeros((1, d_model)),
    }


# ----------------------------------- Main ------------------------------------

if __name__ == "__main__":
    # bf16 activations/weights -> MXU-native matmuls with f32 accumulation.
    dtype = jnp.bfloat16
    B, S, S_MEM = 2, 8, 8
    D_MODEL, N_HEAD, D_FF, NUM_LAYERS = 32, 4, 64, 2

    key = jax.random.PRNGKey(0)
    k_tgt, k_mem, k_params = jax.random.split(key, 3)

    tgt = jax.random.normal(k_tgt, (B, S, D_MODEL)).astype(dtype)
    memory = jax.random.normal(k_mem, (B, S_MEM, D_MODEL)).astype(dtype)

    # NUM_LAYERS "clones" — identical structure & identical deterministic init,
    # matching copy.deepcopy of a single decoder_layer instance. Stacked for lax.scan.
    base_params = init_layer_params(jax.random.fold_in(k_params, 0),
                                    D_MODEL, D_FF, dtype)
    stacked_params = jax.tree_util.tree_map(
        lambda a: jnp.stack([a] * NUM_LAYERS, axis=0), base_params)

    # Causal tgt_mask is generated in-kernel (broadcasted_iota); cross-attention is unmasked.
    out = transformer_decoder_forward(tgt, memory, stacked_params,
                                      nhead=N_HEAD, causal=True)
    out = jax.block_until_ready(out)

    assert out.shape == (B, S, D_MODEL)
    assert bool(jnp.all(jnp.isfinite(out.astype(jnp.float32))))
    print("KERNEL_OK")
</pallas_src>

<mosaic_0001>
module attributes {stable_mosaic.version = 11 : i64} {
  func.func @_matmul_bias_kernel(%arg0: i32, %arg1: i32, %arg2: i32, %arg3: memref<16x32xbf16, #tpu.memory_space<vmem>>, %arg4: memref<32x96xbf16, #tpu.memory_space<vmem>>, %arg5: memref<1x96xbf16, #tpu.memory_space<vmem>>, %arg6: memref<16x96xbf16, #tpu.memory_space<vmem>>, %arg7: memref<16x96xf32, #tpu.memory_space<vmem>>) attributes {dimension_semantics = [#tpu.dimension_semantics<parallel>, #tpu.dimension_semantics<parallel>, #tpu.dimension_semantics<arbitrary>], iteration_bounds = array<i64: 1, 1, 1>, scalar_prefetch = 0 : i64, scratch_operands = 1 : i64, tpu.core_type = #tpu.core_type<tc>, window_params = [{transform_indices = @transform_0, window_bounds = array<i64: 16, 32>}, {transform_indices = @transform_1, window_bounds = array<i64: 32, 96>}, {transform_indices = @transform_2, window_bounds = array<i64: 1, 96>}, {transform_indices = @transform_3, window_bounds = array<i64: 16, 96>}]} {
    %c0_i32 = arith.constant 0 : i32
    %0 = arith.cmpi eq, %arg2, %c0_i32 : i32
    %1 = arith.extui %0 : i1 to i32
    %c0_i32_0 = arith.constant 0 : i32
    %2 = arith.cmpi ne, %1, %c0_i32_0 : i32
    scf.if %2 {
      %cst_10 = arith.constant 0.000000e+00 : f32
      %12 = vector.broadcast %cst_10 : f32 to vector<16x96xf32>
      %c0_11 = arith.constant 0 : index
      %c0_12 = arith.constant 0 : index
      %13 = vector.load %arg7[%c0_11, %c0_12] : memref<16x96xf32, #tpu.memory_space<vmem>>, vector<16x96xf32>
      tpu.vector_store %arg7[%c0_11, %c0_12], %12 {strides = array<i32>} : memref<16x96xf32, #tpu.memory_space<vmem>>, vector<16x96xf32>,
    } else {
    }
    %c0 = arith.constant 0 : index
    %c0_1 = arith.constant 0 : index
    %3 = vector.load %arg7[%c0, %c0_1] : memref<16x96xf32, #tpu.memory_space<vmem>>, vector<16x96xf32>
    %c0_2 = arith.constant 0 : index
    %c0_3 = arith.constant 0 : index
    %4 = vector.load %arg3[%c0_2, %c0_3] : memref<16x32xbf16, #tpu.memory_space<vmem>>, vector<16x32xbf16>
    %c0_4 = arith.constant 0 : index
    %c0_5 = arith.constant 0 : index
    %5 = vector.load %arg4[%c0_4, %c0_5] : memref<32x96xbf16, #tpu.memory_space<vmem>>, vector<32x96xbf16>
    %cst = arith.constant dense<0.000000e+00> : vector<16x96xf32>
    %6 = tpu.matmul %4, %5, %cst {dimension_numbers = #tpu.dot_dimension_numbers<[1], [0], [0], [1], [0, 0, 1, 1], [], []>} : vector<16x32xbf16>, vector<32x96xbf16>, vector<16x96xf32> -> vector<16x96xf32>
    %7 = arith.addf %3, %6 : vector<16x96xf32>
    %c0_6 = arith.constant 0 : index
    %c0_7 = arith.constant 0 : index
    %8 = vector.load %arg7[%c0_6, %c0_7] : memref<16x96xf32, #tpu.memory_space<vmem>>, vector<16x96xf32>
    tpu.vector_store %arg7[%c0_6, %c0_7], %7 {strides = array<i32>} : memref<16x96xf32, #tpu.memory_space<vmem>>, vector<16x96xf32>,
    %c0_i32_8 = arith.constant 0 : i32
    %9 = arith.cmpi eq, %arg2, %c0_i32_8 : i32
    %10 = arith.extui %9 : i1 to i32
    %c0_i32_9 = arith.constant 0 : i32
    %11 = arith.cmpi ne, %10, %c0_i32_9 : i32
    scf.if %11 {
      %c0_10 = arith.constant 0 : index
      %c0_11 = arith.constant 0 : index
      %12 = vector.load %arg7[%c0_10, %c0_11] : memref<16x96xf32, #tpu.memory_space<vmem>>, vector<16x96xf32>
      %c0_12 = arith.constant 0 : index
      %c0_13 = arith.constant 0 : index
      %13 = vector.load %arg5[%c0_12, %c0_13] : memref<1x96xbf16, #tpu.memory_space<vmem>>, vector<1x96xbf16>
      %14 = arith.extf %13 : vector<1x96xbf16> to vector<1x96xf32>
      %15 = vector.broadcast %14 : vector<1x96xf32> to vector<16x96xf32>
      %16 = arith.addf %12, %15 : vector<16x96xf32>
      %17 = arith.truncf %16 : vector<16x96xf32> to vector<16x96xbf16>
      %c0_14 = arith.constant 0 : index
      %c0_15 = arith.constant 0 : index
      %18 = vector.load %arg6[%c0_14, %c0_15] : memref<16x96xbf16, #tpu.memory_space<vmem>>, vector<16x96xbf16>
      tpu.vector_store %arg6[%c0_14, %c0_15], %17 {strides = array<i32>} : memref<16x96xbf16, #tpu.memory_space<vmem>>, vector<16x96xbf16>,
    } else {
    }
    return
  }
  func.func @transform_0(%arg0: i32, %arg1: i32, %arg2: i32) -> (i32, i32) {
    %c0_i32 = arith.constant 0 : i32
    return %arg0, %arg2 : i32, i32
  }
  func.func @transform_1(%arg0: i32, %arg1: i32, %arg2: i32) -> (i32, i32) {
    %c0_i32 = arith.constant 0 : i32
    return %arg2, %arg1 : i32, i32
  }
  func.func @transform_2(%arg0: i32, %arg1: i32, %arg2: i32) -> (i32, i32) {
    %c0_i32 = arith.constant 0 : i32
    %c0_i32_0 = arith.constant 0 : i32
    return %c0_i32, %arg1 : i32, i32
  }
  func.func @transform_3(%arg0: i32, %arg1: i32, %arg2: i32) -> (i32, i32) {
    %c0_i32 = arith.constant 0 : i32
    return %arg0, %arg1 : i32, i32
  }
}

module attributes {stable_mosaic.version = 11 : i64} {
  func.func @_matmul_bias_kernel(%arg0: i32, %arg1: i32, %arg2: i32, %arg3: memref<16x32xbf16, #tpu.memory_space<vmem>>, %arg4: memref<32x32xbf16, #tpu.memory_space<vmem>>, %arg5: memref<1x32xbf16, #tpu.memory_space<vmem>>, %arg6: memref<16x32xbf16, #tpu.memory_space<vmem>>, %arg7: memref<16x32xf32, #tpu.memory_space<vmem>>) attributes {dimension_semantics = [#tpu.dimension_semantics<parallel>, #tpu.dimension_semantics<parallel>, #tpu.dimension_semantics<arbitrary>], iteration_bounds = array<i64: 1, 1, 1>, scalar_prefetch = 0 : i64, scratch_operands = 1 : i64, tpu.core_type = #tpu.core_type<tc>, window_params = [{transform_indices = @transform_0, window_bounds = array<i64: 16, 32>}, {transform_indices = @transform_1, window_bounds = array<i64: 32, 32>}, {transform_indices = @transform_2, window_bounds = array<i64: 1, 32>}, {transform_indices = @transform_3, window_bounds = array<i64: 16, 32>}]} {
    %c0_i32 = arith.constant 0 : i32
    %0 = arith.cmpi eq, %arg2, %c0_i32 : i32
    %1 = arith.extui %0 : i1 to i32
    %c0_i32_0 = arith.constant 0 : i32
    %2 = arith.cmpi ne, %1, %c0_i32_0 : i32
    scf.if %2 {
      %cst_10 = arith.constant 0.000000e+00 : f32
      %12 = vector.broadcast %cst_10 : f32 to vector<16x32xf32>
      %c0_11 = arith.constant 0 : index
      %c0_12 = arith.constant 0 : index
      %13 = vector.load %arg7[%c0_11, %c0_12] : memref<16x32xf32, #tpu.memory_space<vmem>>, vector<16x32xf32>
      tpu.vector_store %arg7[%c0_11, %c0_12], %12 {strides = array<i32>} : memref<16x32xf32, #tpu.memory_space<vmem>>, vector<16x32xf32>,
    } else {
    }
    %c0 = arith.constant 0 : index
    %c0_1 = arith.constant 0 : index
    %3 = vector.load %arg7[%c0, %c0_1] : memref<16x32xf32, #tpu.memory_space<vmem>>, vector<16x32xf32>
    %c0_2 = arith.constant 0 : index
    %c0_3 = arith.constant 0 : index
    %4 = vector.load %arg3[%c0_2, %c0_3] : memref<16x32xbf16, #tpu.memory_space<vmem>>, vector<16x32xbf16>
    %c0_4 = arith.constant 0 : index
    %c0_5 = arith.constant 0 : index
    %5 = vector.load %arg4[%c0_4, %c0_5] : memref<32x32xbf16, #tpu.memory_space<vmem>>, vector<32x32xbf16>
    %cst = arith.constant dense<0.000000e+00> : vector<16x32xf32>
    %6 = tpu.matmul %4, %5, %cst {dimension_numbers = #tpu.dot_dimension_numbers<[1], [0], [0], [1], [0, 0, 1, 1], [], []>} : vector<16x32xbf16>, vector<32x32xbf16>, vector<16x32xf32> -> vector<16x32xf32>
    %7 = arith.addf %3, %6 : vector<16x32xf32>
    %c0_6 = arith.constant 0 : index
    %c0_7 = arith.constant 0 : index
    %8 = vector.load %arg7[%c0_6, %c0_7] : memref<16x32xf32, #tpu.memory_space<vmem>>, vector<16x32xf32>
    tpu.vector_store %arg7[%c0_6, %c0_7], %7 {strides = array<i32>} : memref<16x32xf32, #tpu.memory_space<vmem>>, vector<16x32xf32>,
    %c0_i32_8 = arith.constant 0 : i32
    %9 = arith.cmpi eq, %arg2, %c0_i32_8 : i32
    %10 = arith.extui %9 : i1 to i32
    %c0_i32_9 = arith.constant 0 : i32
    %11 = arith.cmpi ne, %10, %c0_i32_9 : i32
    scf.if %11 {
      %c0_10 = arith.constant 0 : index
      %c0_11 = arith.constant 0 : index
      %12 = vector.load %arg7[%c0_10, %c0_11] : memref<16x32xf32, #tpu.memory_space<vmem>>, vector<16x32xf32>
      %c0_12 = arith.constant 0 : index
      %c0_13 = arith.constant 0 : index
      %13 = vector.load %arg5[%c0_12, %c0_13] : memref<1x32xbf16, #tpu.memory_space<vmem>>, vector<1x32xbf16>
      %14 = arith.extf %13 : vector<1x32xbf16> to vector<1x32xf32>
      %15 = vector.broadcast %14 : vector<1x32xf32> to vector<16x32xf32>
      %16 = arith.addf %12, %15 : vector<16x32xf32>
      %17 = arith.truncf %16 : vector<16x32xf32> to vector<16x32xbf16>
      %c0_14 = arith.constant 0 : index
      %c0_15 = arith.constant 0 : index
      %18 = vector.load %arg6[%c0_14, %c0_15] : memref<16x32xbf16, #tpu.memory_space<vmem>>, vector<16x32xbf16>
      tpu.vector_store %arg6[%c0_14, %c0_15], %17 {strides = array<i32>} : memref<16x32xbf16, #tpu.memory_space<vmem>>, vector<16x32xbf16>,
    } else {
    }
    return
  }
  func.func @transform_0(%arg0: i32, %arg1: i32, %arg2: i32) -> (i32, i32) {
    %c0_i32 = arith.constant 0 : i32
    return %arg0, %arg2 : i32, i32
  }
  func.func @transform_1(%arg0: i32, %arg1: i32, %arg2: i32) -> (i32, i32) {
    %c0_i32 = arith.constant 0 : i32
    return %arg2, %arg1 : i32, i32
  }
  func.func @transform_2(%arg0: i32, %arg1: i32, %arg2: i32) -> (i32, i32) {
    %c0_i32 = arith.constant 0 : i32
    %c0_i32_0 = arith.constant 0 : i32
    return %c0_i32, %arg1 : i32, i32
  }
  func.func @transform_3(%arg0: i32, %arg1: i32, %arg2: i32) -> (i32, i32) {
    %c0_i32 = arith.constant 0 : i32
    return %arg0, %arg1 : i32, i32
  }
}

module attributes {stable_mosaic.version = 11 : i64} {
  func.func @_matmul_residual_ln_kernel(%arg0: i32, %arg1: i32, %arg2: memref<16x32xbf16, #tpu.memory_space<vmem>>, %arg3: memref<32x32xbf16, #tpu.memory_space<vmem>>, %arg4: memref<1x32xbf16, #tpu.memory_space<vmem>>, %arg5: memref<16x32xbf16, #tpu.memory_space<vmem>>, %arg6: memref<1x32xbf16, #tpu.memory_space<vmem>>, %arg7: memref<1x32xbf16, #tpu.memory_space<vmem>>, %arg8: memref<16x32xbf16, #tpu.memory_space<vmem>>, %arg9: memref<16x32xf32, #tpu.memory_space<vmem>>) attributes {dimension_semantics = [#tpu.dimension_semantics<parallel>, #tpu.dimension_semantics<arbitrary>], iteration_bounds = array<i64: 1, 1>, scalar_prefetch = 0 : i64, scratch_operands = 1 : i64, tpu.core_type = #tpu.core_type<tc>, window_params = [{transform_indices = @transform_0, window_bounds = array<i64: 16, 32>}, {transform_indices = @transform_1, window_bounds = array<i64: 32, 32>}, {pipeline_mode = #tpu.pipeline_mode<synchronous>, transform_indices = @transform_2, window_bounds = array<i64: 1, 32>}, {transform_indices = @transform_3, window_bounds = array<i64: 16, 32>}, {pipeline_mode = #tpu.pipeline_mode<synchronous>, transform_indices = @transform_4, window_bounds = array<i64: 1, 32>}, {pipeline_mode = #tpu.pipeline_mode<synchronous>, transform_indices = @transform_5, window_bounds = array<i64: 1, 32>}, {transform_indices = @transform_6, window_bounds = array<i64: 16, 32>}]} {
    %c0_i32 = arith.constant 0 : i32
    %0 = arith.cmpi eq, %arg1, %c0_i32 : i32
    %1 = arith.extui %0 : i1 to i32
    %c0_i32_0 = arith.constant 0 : i32
    %2 = arith.cmpi ne, %1, %c0_i32_0 : i32
    scf.if %2 {
      %cst_10 = arith.constant 0.000000e+00 : f32
      %12 = vector.broadcast %cst_10 : f32 to vector<16x32xf32>
      %c0_11 = arith.constant 0 : index
      %c0_12 = arith.constant 0 : index
      %13 = vector.load %arg9[%c0_11, %c0_12] : memref<16x32xf32, #tpu.memory_space<vmem>>, vector<16x32xf32>
      tpu.vector_store %arg9[%c0_11, %c0_12], %12 {strides = array<i32>} : memref<16x32xf32, #tpu.memory_space<vmem>>, vector<16x32xf32>,
    } else {
    }
    %c0 = arith.constant 0 : index
    %c0_1 = arith.constant 0 : index
    %3 = vector.load %arg9[%c0, %c0_1] : memref<16x32xf32, #tpu.memory_space<vmem>>, vector<16x32xf32>
    %c0_2 = arith.constant 0 : index
    %c0_3 = arith.constant 0 : index
    %4 = vector.load %arg2[%c0_2, %c0_3] : memref<16x32xbf16, #tpu.memory_space<vmem>>, vector<16x32xbf16>
    %c0_4 = arith.constant 0 : index
    %c0_5 = arith.constant 0 : index
    %5 = vector.load %arg3[%c0_4, %c0_5] : memref<32x32xbf16, #tpu.memory_space<vmem>>, vector<32x32xbf16>
    %cst = arith.constant dense<0.000000e+00> : vector<16x32xf32>
    %6 = tpu.matmul %4, %5, %cst {dimension_numbers = #tpu.dot_dimension_numbers<[1], [0], [0], [1], [0, 0, 1, 1], [], []>} : vector<16x32xbf16>, vector<32x32xbf16>, vector<16x32xf32> -> vector<16x32xf32>
    %7 = arith.addf %3, %6 : vector<16x32xf32>
    %c0_6 = arith.constant 0 : index
    %c0_7 = arith.constant 0 : index
    %8 = vector.load %arg9[%c0_6, %c0_7] : memref<16x32xf32, #tpu.memory_space<vmem>>, vector<16x32xf32>
    tpu.vector_store %arg9[%c0_6, %c0_7], %7 {strides = array<i32>} : memref<16x32xf32, #tpu.memory_space<vmem>>, vector<16x32xf32>,
    %c0_i32_8 = arith.constant 0 : i32
    %9 = arith.cmpi eq, %arg1, %c0_i32_8 : i32
    %10 = arith.extui %9 : i1 to i32
    %c0_i32_9 = arith.constant 0 : i32
    %11 = arith.cmpi ne, %10, %c0_i32_9 : i32
    scf.if %11 {
      %c0_10 = arith.constant 0 : index
      %c0_11 = arith.constant 0 : index
      %12 = vector.load %arg9[%c0_10, %c0_11] : memref<16x32xf32, #tpu.memory_space<vmem>>, vector<16x32xf32>
      %c0_12 = arith.constant 0 : index
      %c0_13 = arith.constant 0 : index
      %13 = vector.load %arg4[%c0_12, %c0_13] : memref<1x32xbf16, #tpu.memory_space<vmem>>, vector<1x32xbf16>
      %14 = arith.extf %13 : vector<1x32xbf16> to vector<1x32xf32>
      %15 = vector.broadcast %14 : vector<1x32xf32> to vector<16x32xf32>
      %16 = arith.addf %12, %15 : vector<16x32xf32>
      %c0_14 = arith.constant 0 : index
      %c0_15 = arith.constant 0 : index
      %17 = vector.load %arg5[%c0_14, %c0_15] : memref<16x32xbf16, #tpu.memory_space<vmem>>, vector<16x32xbf16>
      %18 = arith.extf %17 : vector<16x32xbf16> to vector<16x32xf32>
      %19 = arith.addf %16, %18 : vector<16x32xf32>
      %cst_16 = arith.constant dense<0.000000e+00> : vector<16xf32>
      %20 = vector.multi_reduction <add>, %19, %cst_16 [1] : vector<16x32xf32> to vector<16xf32>
      %21 = vector.shape_cast %20 : vector<16xf32> to vector<16x1xf32>
      %cst_17 = arith.constant 3.200000e+01 : f32
      %22 = vector.broadcast %cst_17 : f32 to vector<16x1xf32>
      %23 = arith.divf %21, %22 : vector<16x1xf32>
      %24 = vector.broadcast %23 : vector<16x1xf32> to vector<16x32xf32>
      %25 = arith.subf %19, %24 : vector<16x32xf32>
      %26 = arith.mulf %25, %25 : vector<16x32xf32>
      %cst_18 = arith.constant dense<0.000000e+00> : vector<16xf32>
      %27 = vector.multi_reduction <add>, %26, %cst_18 [1] : vector<16x32xf32> to vector<16xf32>
      %28 = vector.shape_cast %27 : vector<16xf32> to vector<16x1xf32>
      %cst_19 = arith.constant 3.200000e+01 : f32
      %29 = vector.broadcast %cst_19 : f32 to vector<16x1xf32>
      %30 = arith.divf %28, %29 : vector<16x1xf32>
      %31 = vector.broadcast %23 : vector<16x1xf32> to vector<16x32xf32>
      %32 = arith.subf %19, %31 : vector<16x32xf32>
      %cst_20 = arith.constant 9.99999974E-6 : f32
      %33 = vector.broadcast %cst_20 : f32 to vector<16x1xf32>
      %34 = arith.addf %30, %33 : vector<16x1xf32>
      %35 = math.rsqrt %34 : vector<16x1xf32>
      %36 = vector.broadcast %35 : vector<16x1xf32> to vector<16x32xf32>
      %37 = arith.mulf %32, %36 : vector<16x32xf32>
      %c0_21 = arith.constant 0 : index
      %c0_22 = arith.constant 0 : index
      %38 = vector.load %arg6[%c0_21, %c0_22] : memref<1x32xbf16, #tpu.memory_space<vmem>>, vector<1x32xbf16>
      %39 = arith.extf %38 : vector<1x32xbf16> to vector<1x32xf32>
      %40 = vector.broadcast %39 : vector<1x32xf32> to vector<16x32xf32>
      %41 = arith.mulf %37, %40 : vector<16x32xf32>
      %c0_23 = arith.constant 0 : index
      %c0_24 = arith.constant 0 : index
      %42 = vector.load %arg7[%c0_23, %c0_24] : memref<1x32xbf16, #tpu.memory_space<vmem>>, vector<1x32xbf16>
      %43 = arith.extf %42 : vector<1x32xbf16> to vector<1x32xf32>
      %44 = vector.broadcast %43 : vector<1x32xf32> to vector<16x32xf32>
      %45 = arith.addf %41, %44 : vector<16x32xf32>
      %46 = arith.truncf %45 : vector<16x32xf32> to vector<16x32xbf16>
      %c0_25 = arith.constant 0 : index
      %c0_26 = arith.constant 0 : index
      %47 = vector.load %arg8[%c0_25, %c0_26] : memref<16x32xbf16, #tpu.memory_space<vmem>>, vector<16x32xbf16>
      tpu.vector_store %arg8[%c0_25, %c0_26], %46 {strides = array<i32>} : memref<16x32xbf16, #tpu.memory_space<vmem>>, vector<16x32xbf16>,
    } else {
    }
    return
  }
  func.func @transform_0(%arg0: i32, %arg1: i32) -> (i32, i32) {
    %c0_i32 = arith.constant 0 : i32
    return %arg0, %arg1 : i32, i32
  }
  func.func @transform_1(%arg0: i32, %arg1: i32) -> (i32, i32) {
    %c0_i32 = arith.constant 0 : i32
    %c0_i32_0 = arith.constant 0 : i32
    return %arg1, %c0_i32 : i32, i32
  }
  func.func @transform_2(%arg0: i32, %arg1: i32) -> (i32, i32) {
    %c0_i32 = arith.constant 0 : i32
    %c0_i32_0 = arith.constant 0 : i32
    %c0_i32_1 = arith.constant 0 : i32
    return %c0_i32, %c0_i32_0 : i32, i32
  }
  func.func @transform_3(%arg0: i32, %arg1: i32) -> (i32, i32) {
    %c0_i32 = arith.constant 0 : i32
    %c0_i32_0 = arith.constant 0 : i32
    return %arg0, %c0_i32 : i32, i32
  }
  func.func @transform_4(%arg0: i32, %arg1: i32) -> (i32, i32) {
    %c0_i32 = arith.constant 0 : i32
    %c0_i32_0 = arith.constant 0 : i32
    %c0_i32_1 = arith.constant 0 : i32
    return %c0_i32, %c0_i32_0 : i32, i32
  }
  func.func @transform_5(%arg0: i32, %arg1: i32) -> (i32, i32) {
    %c0_i32 = arith.constant 0 : i32
    %c0_i32_0 = arith.constant 0 : i32
    %c0_i32_1 = arith.constant 0 : i32
    return %c0_i32, %c0_i32_0 : i32, i32
  }
  func.func @transform_6(%arg0: i32, %arg1: i32) -> (i32, i32) {
    %c0_i32 = arith.constant 0 : i32
    %c0_i32_0 = arith.constant 0 : i32
    return %arg0, %c0_i32 : i32, i32
  }
}

module attributes {stable_mosaic.version = 11 : i64} {
  func.func @_mha_kernel(%arg0: i32, %arg1: memref<1x8x32xbf16, #tpu.memory_space<vmem>>, %arg2: memref<1x8x32xbf16, #tpu.memory_space<vmem>>, %arg3: memref<1x8x32xbf16, #tpu.memory_space<vmem>>, %arg4: memref<1x8x32xbf16, #tpu.memory_space<vmem>>) attributes {dimension_semantics = [#tpu.dimension_semantics<parallel>], iteration_bounds = array<i64: 2>, scalar_prefetch = 0 : i64, scratch_operands = 0 : i64, tpu.core_type = #tpu.core_type<tc>, window_params = [{transform_indices = @transform_0, window_bounds = array<i64: 1, 8, 32>}, {transform_indices = @transform_1, window_bounds = array<i64: 1, 8, 32>}, {transform_indices = @transform_2, window_bounds = array<i64: 1, 8, 32>}, {transform_indices = @transform_3, window_bounds = array<i64: 1, 8, 32>}]} {
    %c0 = arith.constant 0 : index
    %c0_0 = arith.constant 0 : index
    %c0_1 = arith.constant 0 : index
    %0 = vector.load %arg1[%c0, %c0_0, %c0_1] : memref<1x8x32xbf16, #tpu.memory_space<vmem>>, vector<1x8x32xbf16>
    %1 = vector.shape_cast %0 : vector<1x8x32xbf16> to vector<8x32xbf16>
    %c0_2 = arith.constant 0 : index
    %c0_3 = arith.constant 0 : index
    %c0_4 = arith.constant 0 : index
    %2 = vector.load %arg2[%c0_2, %c0_3, %c0_4] : memref<1x8x32xbf16, #tpu.memory_space<vmem>>, vector<1x8x32xbf16>
    %3 = vector.shape_cast %2 : vector<1x8x32xbf16> to vector<8x32xbf16>
    %c0_5 = arith.constant 0 : index
    %c0_6 = arith.constant 0 : index
    %c0_7 = arith.constant 0 : index
    %4 = vector.load %arg3[%c0_5, %c0_6, %c0_7] : memref<1x8x32xbf16, #tpu.memory_space<vmem>>, vector<1x8x32xbf16>
    %5 = vector.shape_cast %4 : vector<1x8x32xbf16> to vector<8x32xbf16>
    %6 = tpu.iota {dimensions = array<i32: 0>} : vector<8x8xi32>
    %7 = tpu.iota {dimensions = array<i32: 1>} : vector<8x8xi32>
    %8 = arith.cmpi sge, %6, %7 : vector<8x8xi32>
    %9 = vector.extract_strided_slice %1 {offsets = [0, 0], sizes = [8, 8], strides = [1, 1]} : vector<8x32xbf16> to vector<8x8xbf16>
    %10 = vector.extract_strided_slice %3 {offsets = [0, 0], sizes = [8, 8], strides = [1, 1]} : vector<8x32xbf16> to vector<8x8xbf16>
    %11 = vector.extract_strided_slice %5 {offsets = [0, 0], sizes = [8, 8], strides = [1, 1]} : vector<8x32xbf16> to vector<8x8xbf16>
    %cst = arith.constant dense<0.000000e+00> : vector<8x8xf32>
    %12 = tpu.matmul %9, %10, %cst {dimension_numbers = #tpu.dot_dimension_numbers<[1], [1], [0], [0], [0, 0, 1, 0], [], []>} : vector<8x8xbf16>, vector<8x8xbf16>, vector<8x8xf32> -> vector<8x8xf32>
    %cst_8 = arith.constant 0.353553385 : f32
    %13 = vector.broadcast %cst_8 : f32 to vector<8x8xf32>
    %14 = arith.mulf %12, %13 : vector<8x8xf32>
    %cst_9 = arith.constant -1.000000e+30 : f32
    %15 = vector.broadcast %cst_9 : f32 to vector<8x8xf32>
    %16 = arith.select %8, %14, %15 : vector<8x8xi1>, vector<8x8xf32>
    %cst_10 = arith.constant dense<0xFF800000> : vector<8xf32>
    %17 = vector.multi_reduction <maximumf>, %16, %cst_10 [1] : vector<8x8xf32> to vector<8xf32>
    %18 = vector.shape_cast %17 : vector<8xf32> to vector<8x1xf32>
    %19 = vector.broadcast %18 : vector<8x1xf32> to vector<8x8xf32>
    %20 = arith.subf %16, %19 : vector<8x8xf32>
    %21 = math.exp %20 : vector<8x8xf32>
    %cst_11 = arith.constant dense<0.000000e+00> : vector<8xf32>
    %22 = vector.multi_reduction <add>, %21, %cst_11 [1] : vector<8x8xf32> to vector<8xf32>
    %23 = vector.shape_cast %22 : vector<8xf32> to vector<8x1xf32>
    %24 = tpu.reciprocal %23 {approx = true} : vector<8x1xf32> -> vector<8x1xf32>
    %25 = vector.broadcast %24 : vector<8x1xf32> to vector<8x8xf32>
    %26 = arith.mulf %21, %25 : vector<8x8xf32>
    %27 = arith.truncf %26 : vector<8x8xf32> to vector<8x8xbf16>
    %cst_12 = arith.constant dense<0.000000e+00> : vector<8x8xf32>
    %28 = tpu.matmul %27, %11, %cst_12 {dimension_numbers = #tpu.dot_dimension_numbers<[1], [0], [0], [1], [0, 0, 1, 1], [], []>} : vector<8x8xbf16>, vector<8x8xbf16>, vector<8x8xf32> -> vector<8x8xf32>
    %29 = vector.extract_strided_slice %1 {offsets = [0, 8], sizes = [8, 8], strides = [1, 1]} : vector<8x32xbf16> to vector<8x8xbf16>
    %30 = vector.extract_strided_slice %3 {offsets = [0, 8], sizes = [8, 8], strides = [1, 1]} : vector<8x32xbf16> to vector<8x8xbf16>
    %31 = vector.extract_strided_slice %5 {offsets = [0, 8], sizes = [8, 8], strides = [1, 1]} : vector<8x32xbf16> to vector<8x8xbf16>
    %cst_13 = arith.constant dense<0.000000e+00> : vector<8x8xf32>
    %32 = tpu.matmul %29, %30, %cst_13 {dimension_numbers = #tpu.dot_dimension_numbers<[1], [1], [0], [0], [0, 0, 1, 0], [], []>} : vector<8x8xbf16>, vector<8x8xbf16>, vector<8x8xf32> -> vector<8x8xf32>
    %cst_14 = arith.constant 0.353553385 : f32
    %33 = vector.broadcast %cst_14 : f32 to vector<8x8xf32>
    %34 = arith.mulf %32, %33 : vector<8x8xf32>
    %cst_15 = arith.constant -1.000000e+30 : f32
    %35 = vector.broadcast %cst_15 : f32 to vector<8x8xf32>
    %36 = arith.select %8, %34, %35 : vector<8x8xi1>, vector<8x8xf32>
    %cst_16 = arith.constant dense<0xFF800000> : vector<8xf32>
    %37 = vector.multi_reduction <maximumf>, %36, %cst_16 [1] : vector<8x8xf32> to vector<8xf32>
    %38 = vector.shape_cast %37 : vector<8xf32> to vector<8x1xf32>
    %39 = vector.broadcast %38 : vector<8x1xf32> to vector<8x8xf32>
    %40 = arith.subf %36, %39 : vector<8x8xf32>
    %41 = math.exp %40 : vector<8x8xf32>
    %cst_17 = arith.constant dense<0.000000e+00> : vector<8xf32>
    %42 = vector.multi_reduction <add>, %41, %cst_17 [1] : vector<8x8xf32> to vector<8xf32>
    %43 = vector.shape_cast %42 : vector<8xf32> to vector<8x1xf32>
    %44 = tpu.reciprocal %43 {approx = true} : vector<8x1xf32> -> vector<8x1xf32>
    %45 = vector.broadcast %44 : vector<8x1xf32> to vector<8x8xf32>
    %46 = arith.mulf %41, %45 : vector<8x8xf32>
    %47 = arith.truncf %46 : vector<8x8xf32> to vector<8x8xbf16>
    %cst_18 = arith.constant dense<0.000000e+00> : vector<8x8xf32>
    %48 = tpu.matmul %47, %31, %cst_18 {dimension_numbers = #tpu.dot_dimension_numbers<[1], [0], [0], [1], [0, 0, 1, 1], [], []>} : vector<8x8xbf16>, vector<8x8xbf16>, vector<8x8xf32> -> vector<8x8xf32>
    %49 = vector.extract_strided_slice %1 {offsets = [0, 16], sizes = [8, 8], strides = [1, 1]} : vector<8x32xbf16> to vector<8x8xbf16>
    %50 = vector.extract_strided_slice %3 {offsets = [0, 16], sizes = [8, 8], strides = [1, 1]} : vector<8x32xbf16> to vector<8x8xbf16>
    %51 = vector.extract_strided_slice %5 {offsets = [0, 16], sizes = [8, 8], strides = [1, 1]} : vector<8x32xbf16> to vector<8x8xbf16>
    %cst_19 = arith.constant dense<0.000000e+00> : vector<8x8xf32>
    %52 = tpu.matmul %49, %50, %cst_19 {dimension_numbers = #tpu.dot_dimension_numbers<[1], [1], [0], [0], [0, 0, 1, 0], [], []>} : vector<8x8xbf16>, vector<8x8xbf16>, vector<8x8xf32> -> vector<8x8xf32>
    %cst_20 = arith.constant 0.353553385 : f32
    %53 = vector.broadcast %cst_20 : f32 to vector<8x8xf32>
    %54 = arith.mulf %52, %53 : vector<8x8xf32>
    %cst_21 = arith.constant -1.000000e+30 : f32
    %55 = vector.broadcast %cst_21 : f32 to vector<8x8xf32>
    %56 = arith.select %8, %54, %55 : vector<8x8xi1>, vector<8x8xf32>
    %cst_22 = arith.constant dense<0xFF800000> : vector<8xf32>
    %57 = vector.multi_reduction <maximumf>, %56, %cst_22 [1] : vector<8x8xf32> to vector<8xf32>
    %58 = vector.shape_cast %57 : vector<8xf32> to vector<8x1xf32>
    %59 = vector.broadcast %58 : vector<8x1xf32> to vector<8x8xf32>
    %60 = arith.subf %56, %59 : vector<8x8xf32>
    %61 = math.exp %60 : vector<8x8xf32>
    %cst_23 = arith.constant dense<0.000000e+00> : vector<8xf32>
    %62 = vector.multi_reduction <add>, %61, %cst_23 [1] : vector<8x8xf32> to vector<8xf32>
    %63 = vector.shape_cast %62 : vector<8xf32> to vector<8x1xf32>
    %64 = tpu.reciprocal %63 {approx = true} : vector<8x1xf32> -> vector<8x1xf32>
    %65 = vector.broadcast %64 : vector<8x1xf32> to vector<8x8xf32>
    %66 = arith.mulf %61, %65 : vector<8x8xf32>
    %67 = arith.truncf %66 : vector<8x8xf32> to vector<8x8xbf16>
    %cst_24 = arith.constant dense<0.000000e+00> : vector<8x8xf32>
    %68 = tpu.matmul %67, %51, %cst_24 {dimension_numbers = #tpu.dot_dimension_numbers<[1], [0], [0], [1], [0, 0, 1, 1], [], []>} : vector<8x8xbf16>, vector<8x8xbf16>, vector<8x8xf32> -> vector<8x8xf32>
    %69 = vector.extract_strided_slice %1 {offsets = [0, 24], sizes = [8, 8], strides = [1, 1]} : vector<8x32xbf16> to vector<8x8xbf16>
    %70 = vector.extract_strided_slice %3 {offsets = [0, 24], sizes = [8, 8], strides = [1, 1]} : vector<8x32xbf16> to vector<8x8xbf16>
    %71 = vector.extract_strided_slice %5 {offsets = [0, 24], sizes = [8, 8], strides = [1, 1]} : vector<8x32xbf16> to vector<8x8xbf16>
    %cst_25 = arith.constant dense<0.000000e+00> : vector<8x8xf32>
    %72 = tpu.matmul %69, %70, %cst_25 {dimension_numbers = #tpu.dot_dimension_numbers<[1], [1], [0], [0], [0, 0, 1, 0], [], []>} : vector<8x8xbf16>, vector<8x8xbf16>, vector<8x8xf32> -> vector<8x8xf32>
    %cst_26 = arith.constant 0.353553385 : f32
    %73 = vector.broadcast %cst_26 : f32 to vector<8x8xf32>
    %74 = arith.mulf %72, %73 : vector<8x8xf32>
    %cst_27 = arith.constant -1.000000e+30 : f32
    %75 = vector.broadcast %cst_27 : f32 to vector<8x8xf32>
    %76 = arith.select %8, %74, %75 : vector<8x8xi1>, vector<8x8xf32>
    %cst_28 = arith.constant dense<0xFF800000> : vector<8xf32>
    %77 = vector.multi_reduction <maximumf>, %76, %cst_28 [1] : vector<8x8xf32> to vector<8xf32>
    %78 = vector.shape_cast %77 : vector<8xf32> to vector<8x1xf32>
    %79 = vector.broadcast %78 : vector<8x1xf32> to vector<8x8xf32>
    %80 = arith.subf %76, %79 : vector<8x8xf32>
    %81 = math.exp %80 : vector<8x8xf32>
    %cst_29 = arith.constant dense<0.000000e+00> : vector<8xf32>
    %82 = vector.multi_reduction <add>, %81, %cst_29 [1] : vector<8x8xf32> to vector<8xf32>
    %83 = vector.shape_cast %82 : vector<8xf32> to vector<8x1xf32>
    %84 = tpu.reciprocal %83 {approx = true} : vector<8x1xf32> -> vector<8x1xf32>
    %85 = vector.broadcast %84 : vector<8x1xf32> to vector<8x8xf32>
    %86 = arith.mulf %81, %85 : vector<8x8xf32>
    %87 = arith.truncf %86 : vector<8x8xf32> to vector<8x8xbf16>
    %cst_30 = arith.constant dense<0.000000e+00> : vector<8x8xf32>
    %88 = tpu.matmul %87, %71, %cst_30 {dimension_numbers = #tpu.dot_dimension_numbers<[1], [0], [0], [1], [0, 0, 1, 1], [], []>} : vector<8x8xbf16>, vector<8x8xbf16>, vector<8x8xf32> -> vector<8x8xf32>
    %89 = tpu.concatenate %28, %48, %68, %88 in 1 : vector<8x8xf32>, vector<8x8xf32>, vector<8x8xf32>, vector<8x8xf32> -> vector<8x32xf32>
    %90 = arith.truncf %89 : vector<8x32xf32> to vector<8x32xbf16>
    %c0_31 = arith.constant 0 : index
    %c0_32 = arith.constant 0 : index
    %c0_33 = arith.constant 0 : index
    %91 = vector.load %arg4[%c0_31, %c0_32, %c0_33] : memref<1x8x32xbf16, #tpu.memory_space<vmem>>, vector<1x8x32xbf16>
    %92 = vector.shape_cast %91 : vector<1x8x32xbf16> to vector<8x32xbf16>
    %93 = vector.shape_cast %90 : vector<8x32xbf16> to vector<1x8x32xbf16>
    tpu.vector_store %arg4[%c0_31, %c0_32, %c0_33], %93 {strides = array<i32>} : memref<1x8x32xbf16, #tpu.memory_space<vmem>>, vector<1x8x32xbf16>,
    return
  }
  func.func @transform_0(%arg0: i32) -> (i32, i32, i32) {
    %c0_i32 = arith.constant 0 : i32
    %c0_i32_0 = arith.constant 0 : i32
    %c0_i32_1 = arith.constant 0 : i32
    return %arg0, %c0_i32, %c0_i32_0 : i32, i32, i32
  }
  func.func @transform_1(%arg0: i32) -> (i32, i32, i32) {
    %c0_i32 = arith.constant 0 : i32
    %c0_i32_0 = arith.constant 0 : i32
    %c0_i32_1 = arith.constant 0 : i32
    return %arg0, %c0_i32, %c0_i32_0 : i32, i32, i32
  }
  func.func @transform_2(%arg0: i32) -> (i32, i32, i32) {
    %c0_i32 = arith.constant 0 : i32
    %c0_i32_0 = arith.constant 0 : i32
    %c0_i32_1 = arith.constant 0 : i32
    return %arg0, %c0_i32, %c0_i32_0 : i32, i32, i32
  }
  func.func @transform_3(%arg0: i32) -> (i32, i32, i32) {
    %c0_i32 = arith.constant 0 : i32
    %c0_i32_0 = arith.constant 0 : i32
    %c0_i32_1 = arith.constant 0 : i32
    return %arg0, %c0_i32, %c0_i32_0 : i32, i32, i32
  }
}

module attributes {stable_mosaic.version = 11 : i64} {
  func.func @_mha_kernel(%arg0: i32, %arg1: memref<1x8x32xbf16, #tpu.memory_space<vmem>>, %arg2: memref<1x8x32xbf16, #tpu.memory_space<vmem>>, %arg3: memref<1x8x32xbf16, #tpu.memory_space<vmem>>, %arg4: memref<1x8x32xbf16, #tpu.memory_space<vmem>>) attributes {dimension_semantics = [#tpu.dimension_semantics<parallel>], iteration_bounds = array<i64: 2>, scalar_prefetch = 0 : i64, scratch_operands = 0 : i64, tpu.core_type = #tpu.core_type<tc>, window_params = [{transform_indices = @transform_0, window_bounds = array<i64: 1, 8, 32>}, {transform_indices = @transform_1, window_bounds = array<i64: 1, 8, 32>}, {transform_indices = @transform_2, window_bounds = array<i64: 1, 8, 32>}, {transform_indices = @transform_3, window_bounds = array<i64: 1, 8, 32>}]} {
    %c0 = arith.constant 0 : index
    %c0_0 = arith.constant 0 : index
    %c0_1 = arith.constant 0 : index
    %0 = vector.load %arg1[%c0, %c0_0, %c0_1] : memref<1x8x32xbf16, #tpu.memory_space<vmem>>, vector<1x8x32xbf16>
    %1 = vector.shape_cast %0 : vector<1x8x32xbf16> to vector<8x32xbf16>
    %c0_2 = arith.constant 0 : index
    %c0_3 = arith.constant 0 : index
    %c0_4 = arith.constant 0 : index
    %2 = vector.load %arg2[%c0_2, %c0_3, %c0_4] : memref<1x8x32xbf16, #tpu.memory_space<vmem>>, vector<1x8x32xbf16>
    %3 = vector.shape_cast %2 : vector<1x8x32xbf16> to vector<8x32xbf16>
    %c0_5 = arith.constant 0 : index
    %c0_6 = arith.constant 0 : index
    %c0_7 = arith.constant 0 : index
    %4 = vector.load %arg3[%c0_5, %c0_6, %c0_7] : memref<1x8x32xbf16, #tpu.memory_space<vmem>>, vector<1x8x32xbf16>
    %5 = vector.shape_cast %4 : vector<1x8x32xbf16> to vector<8x32xbf16>
    %6 = vector.extract_strided_slice %1 {offsets = [0, 0], sizes = [8, 8], strides = [1, 1]} : vector<8x32xbf16> to vector<8x8xbf16>
    %7 = vector.extract_strided_slice %3 {offsets = [0, 0], sizes = [8, 8], strides = [1, 1]} : vector<8x32xbf16> to vector<8x8xbf16>
    %8 = vector.extract_strided_slice %5 {offsets = [0, 0], sizes = [8, 8], strides = [1, 1]} : vector<8x32xbf16> to vector<8x8xbf16>
    %cst = arith.constant dense<0.000000e+00> : vector<8x8xf32>
    %9 = tpu.matmul %6, %7, %cst {dimension_numbers = #tpu.dot_dimension_numbers<[1], [1], [0], [0], [0, 0, 1, 0], [], []>} : vector<8x8xbf16>, vector<8x8xbf16>, vector<8x8xf32> -> vector<8x8xf32>
    %cst_8 = arith.constant 0.353553385 : f32
    %10 = vector.broadcast %cst_8 : f32 to vector<8x8xf32>
    %11 = arith.mulf %9, %10 : vector<8x8xf32>
    %cst_9 = arith.constant dense<0xFF800000> : vector<8xf32>
    %12 = vector.multi_reduction <maximumf>, %11, %cst_9 [1] : vector<8x8xf32> to vector<8xf32>
    %13 = vector.shape_cast %12 : vector<8xf32> to vector<8x1xf32>
    %14 = vector.broadcast %13 : vector<8x1xf32> to vector<8x8xf32>
    %15 = arith.subf %11, %14 : vector<8x8xf32>
    %16 = math.exp %15 : vector<8x8xf32>
    %cst_10 = arith.constant dense<0.000000e+00> : vector<8xf32>
    %17 = vector.multi_reduction <add>, %16, %cst_10 [1] : vector<8x8xf32> to vector<8xf32>
    %18 = vector.shape_cast %17 : vector<8xf32> to vector<8x1xf32>
    %19 = tpu.reciprocal %18 {approx = true} : vector<8x1xf32> -> vector<8x1xf32>
    %20 = vector.broadcast %19 : vector<8x1xf32> to vector<8x8xf32>
    %21 = arith.mulf %16, %20 : vector<8x8xf32>
    %22 = arith.truncf %21 : vector<8x8xf32> to vector<8x8xbf16>
    %cst_11 = arith.constant dense<0.000000e+00> : vector<8x8xf32>
    %23 = tpu.matmul %22, %8, %cst_11 {dimension_numbers = #tpu.dot_dimension_numbers<[1], [0], [0], [1], [0, 0, 1, 1], [], []>} : vector<8x8xbf16>, vector<8x8xbf16>, vector<8x8xf32> -> vector<8x8xf32>
    %24 = vector.extract_strided_slice %1 {offsets = [0, 8], sizes = [8, 8], strides = [1, 1]} : vector<8x32xbf16> to vector<8x8xbf16>
    %25 = vector.extract_strided_slice %3 {offsets = [0, 8], sizes = [8, 8], strides = [1, 1]} : vector<8x32xbf16> to vector<8x8xbf16>
    %26 = vector.extract_strided_slice %5 {offsets = [0, 8], sizes = [8, 8], strides = [1, 1]} : vector<8x32xbf16> to vector<8x8xbf16>
    %cst_12 = arith.constant dense<0.000000e+00> : vector<8x8xf32>
    %27 = tpu.matmul %24, %25, %cst_12 {dimension_numbers = #tpu.dot_dimension_numbers<[1], [1], [0], [0], [0, 0, 1, 0], [], []>} : vector<8x8xbf16>, vector<8x8xbf16>, vector<8x8xf32> -> vector<8x8xf32>
    %cst_13 = arith.constant 0.353553385 : f32
    %28 = vector.broadcast %cst_13 : f32 to vector<8x8xf32>
    %29 = arith.mulf %27, %28 : vector<8x8xf32>
    %cst_14 = arith.constant dense<0xFF800000> : vector<8xf32>
    %30 = vector.multi_reduction <maximumf>, %29, %cst_14 [1] : vector<8x8xf32> to vector<8xf32>
    %31 = vector.shape_cast %30 : vector<8xf32> to vector<8x1xf32>
    %32 = vector.broadcast %31 : vector<8x1xf32> to vector<8x8xf32>
    %33 = arith.subf %29, %32 : vector<8x8xf32>
    %34 = math.exp %33 : vector<8x8xf32>
    %cst_15 = arith.constant dense<0.000000e+00> : vector<8xf32>
    %35 = vector.multi_reduction <add>, %34, %cst_15 [1] : vector<8x8xf32> to vector<8xf32>
    %36 = vector.shape_cast %35 : vector<8xf32> to vector<8x1xf32>
    %37 = tpu.reciprocal %36 {approx = true} : vector<8x1xf32> -> vector<8x1xf32>
    %38 = vector.broadcast %37 : vector<8x1xf32> to vector<8x8xf32>
    %39 = arith.mulf %34, %38 : vector<8x8xf32>
    %40 = arith.truncf %39 : vector<8x8xf32> to vector<8x8xbf16>
    %cst_16 = arith.constant dense<0.000000e+00> : vector<8x8xf32>
    %41 = tpu.matmul %40, %26, %cst_16 {dimension_numbers = #tpu.dot_dimension_numbers<[1], [0], [0], [1], [0, 0, 1, 1], [], []>} : vector<8x8xbf16>, vector<8x8xbf16>, vector<8x8xf32> -> vector<8x8xf32>
    %42 = vector.extract_strided_slice %1 {offsets = [0, 16], sizes = [8, 8], strides = [1, 1]} : vector<8x32xbf16> to vector<8x8xbf16>
    %43 = vector.extract_strided_slice %3 {offsets = [0, 16], sizes = [8, 8], strides = [1, 1]} : vector<8x32xbf16> to vector<8x8xbf16>
    %44 = vector.extract_strided_slice %5 {offsets = [0, 16], sizes = [8, 8], strides = [1, 1]} : vector<8x32xbf16> to vector<8x8xbf16>
    %cst_17 = arith.constant dense<0.000000e+00> : vector<8x8xf32>
    %45 = tpu.matmul %42, %43, %cst_17 {dimension_numbers = #tpu.dot_dimension_numbers<[1], [1], [0], [0], [0, 0, 1, 0], [], []>} : vector<8x8xbf16>, vector<8x8xbf16>, vector<8x8xf32> -> vector<8x8xf32>
    %cst_18 = arith.constant 0.353553385 : f32
    %46 = vector.broadcast %cst_18 : f32 to vector<8x8xf32>
    %47 = arith.mulf %45, %46 : vector<8x8xf32>
    %cst_19 = arith.constant dense<0xFF800000> : vector<8xf32>
    %48 = vector.multi_reduction <maximumf>, %47, %cst_19 [1] : vector<8x8xf32> to vector<8xf32>
    %49 = vector.shape_cast %48 : vector<8xf32> to vector<8x1xf32>
    %50 = vector.broadcast %49 : vector<8x1xf32> to vector<8x8xf32>
    %51 = arith.subf %47, %50 : vector<8x8xf32>
    %52 = math.exp %51 : vector<8x8xf32>
    %cst_20 = arith.constant dense<0.000000e+00> : vector<8xf32>
    %53 = vector.multi_reduction <add>, %52, %cst_20 [1] : vector<8x8xf32> to vector<8xf32>
    %54 = vector.shape_cast %53 : vector<8xf32> to vector<8x1xf32>
    %55 = tpu.reciprocal %54 {approx = true} : vector<8x1xf32> -> vector<8x1xf32>
    %56 = vector.broadcast %55 : vector<8x1xf32> to vector<8x8xf32>
    %57 = arith.mulf %52, %56 : vector<8x8xf32>
    %58 = arith.truncf %57 : vector<8x8xf32> to vector<8x8xbf16>
    %cst_21 = arith.constant dense<0.000000e+00> : vector<8x8xf32>
    %59 = tpu.matmul %58, %44, %cst_21 {dimension_numbers = #tpu.dot_dimension_numbers<[1], [0], [0], [1], [0, 0, 1, 1], [], []>} : vector<8x8xbf16>, vector<8x8xbf16>, vector<8x8xf32> -> vector<8x8xf32>
    %60 = vector.extract_strided_slice %1 {offsets = [0, 24], sizes = [8, 8], strides = [1, 1]} : vector<8x32xbf16> to vector<8x8xbf16>
    %61 = vector.extract_strided_slice %3 {offsets = [0, 24], sizes = [8, 8], strides = [1, 1]} : vector<8x32xbf16> to vector<8x8xbf16>
    %62 = vector.extract_strided_slice %5 {offsets = [0, 24], sizes = [8, 8], strides = [1, 1]} : vector<8x32xbf16> to vector<8x8xbf16>
    %cst_22 = arith.constant dense<0.000000e+00> : vector<8x8xf32>
    %63 = tpu.matmul %60, %61, %cst_22 {dimension_numbers = #tpu.dot_dimension_numbers<[1], [1], [0], [0], [0, 0, 1, 0], [], []>} : vector<8x8xbf16>, vector<8x8xbf16>, vector<8x8xf32> -> vector<8x8xf32>
    %cst_23 = arith.constant 0.353553385 : f32
    %64 = vector.broadcast %cst_23 : f32 to vector<8x8xf32>
    %65 = arith.mulf %63, %64 : vector<8x8xf32>
    %cst_24 = arith.constant dense<0xFF800000> : vector<8xf32>
    %66 = vector.multi_reduction <maximumf>, %65, %cst_24 [1] : vector<8x8xf32> to vector<8xf32>
    %67 = vector.shape_cast %66 : vector<8xf32> to vector<8x1xf32>
    %68 = vector.broadcast %67 : vector<8x1xf32> to vector<8x8xf32>
    %69 = arith.subf %65, %68 : vector<8x8xf32>
    %70 = math.exp %69 : vector<8x8xf32>
    %cst_25 = arith.constant dense<0.000000e+00> : vector<8xf32>
    %71 = vector.multi_reduction <add>, %70, %cst_25 [1] : vector<8x8xf32> to vector<8xf32>
    %72 = vector.shape_cast %71 : vector<8xf32> to vector<8x1xf32>
    %73 = tpu.reciprocal %72 {approx = true} : vector<8x1xf32> -> vector<8x1xf32>
    %74 = vector.broadcast %73 : vector<8x1xf32> to vector<8x8xf32>
    %75 = arith.mulf %70, %74 : vector<8x8xf32>
    %76 = arith.truncf %75 : vector<8x8xf32> to vector<8x8xbf16>
    %cst_26 = arith.constant dense<0.000000e+00> : vector<8x8xf32>
    %77 = tpu.matmul %76, %62, %cst_26 {dimension_numbers = #tpu.dot_dimension_numbers<[1], [0], [0], [1], [0, 0, 1, 1], [], []>} : vector<8x8xbf16>, vector<8x8xbf16>, vector<8x8xf32> -> vector<8x8xf32>
    %78 = tpu.concatenate %23, %41, %59, %77 in 1 : vector<8x8xf32>, vector<8x8xf32>, vector<8x8xf32>, vector<8x8xf32> -> vector<8x32xf32>
    %79 = arith.truncf %78 : vector<8x32xf32> to vector<8x32xbf16>
    %c0_27 = arith.constant 0 : index
    %c0_28 = arith.constant 0 : index
    %c0_29 = arith.constant 0 : index
    %80 = vector.load %arg4[%c0_27, %c0_28, %c0_29] : memref<1x8x32xbf16, #tpu.memory_space<vmem>>, vector<1x8x32xbf16>
    %81 = vector.shape_cast %80 : vector<1x8x32xbf16> to vector<8x32xbf16>
    %82 = vector.shape_cast %79 : vector<8x32xbf16> to vector<1x8x32xbf16>
    tpu.vector_store %arg4[%c0_27, %c0_28, %c0_29], %82 {strides = array<i32>} : memref<1x8x32xbf16, #tpu.memory_space<vmem>>, vector<1x8x32xbf16>,
    return
  }
  func.func @transform_0(%arg0: i32) -> (i32, i32, i32) {
    %c0_i32 = arith.constant 0 : i32
    %c0_i32_0 = arith.constant 0 : i32
    %c0_i32_1 = arith.constant 0 : i32
    return %arg0, %c0_i32, %c0_i32_0 : i32, i32, i32
  }
  func.func @transform_1(%arg0: i32) -> (i32, i32, i32) {
    %c0_i32 = arith.constant 0 : i32
    %c0_i32_0 = arith.constant 0 : i32
    %c0_i32_1 = arith.constant 0 : i32
    return %arg0, %c0_i32, %c0_i32_0 : i32, i32, i32
  }
  func.func @transform_2(%arg0: i32) -> (i32, i32, i32) {
    %c0_i32 = arith.constant 0 : i32
    %c0_i32_0 = arith.constant 0 : i32
    %c0_i32_1 = arith.constant 0 : i32
    return %arg0, %c0_i32, %c0_i32_0 : i32, i32, i32
  }
  func.func @transform_3(%arg0: i32) -> (i32, i32, i32) {
    %c0_i32 = arith.constant 0 : i32
    %c0_i32_0 = arith.constant 0 : i32
    %c0_i32_1 = arith.constant 0 : i32
    return %arg0, %c0_i32, %c0_i32_0 : i32, i32, i32
  }
}

module attributes {stable_mosaic.version = 11 : i64} {
  func.func @_matmul_bias_kernel(%arg0: i32, %arg1: i32, %arg2: i32, %arg3: memref<16x32xbf16, #tpu.memory_space<vmem>>, %arg4: memref<32x64xbf16, #tpu.memory_space<vmem>>, %arg5: memref<1x64xbf16, #tpu.memory_space<vmem>>, %arg6: memref<16x64xbf16, #tpu.memory_space<vmem>>, %arg7: memref<16x64xf32, #tpu.memory_space<vmem>>) attributes {dimension_semantics = [#tpu.dimension_semantics<parallel>, #tpu.dimension_semantics<parallel>, #tpu.dimension_semantics<arbitrary>], iteration_bounds = array<i64: 1, 1, 1>, scalar_prefetch = 0 : i64, scratch_operands = 1 : i64, tpu.core_type = #tpu.core_type<tc>, window_params = [{transform_indices = @transform_0, window_bounds = array<i64: 16, 32>}, {transform_indices = @transform_1, window_bounds = array<i64: 32, 64>}, {transform_indices = @transform_2, window_bounds = array<i64: 1, 64>}, {transform_indices = @transform_3, window_bounds = array<i64: 16, 64>}]} {
    %c0_i32 = arith.constant 0 : i32
    %0 = arith.cmpi eq, %arg2, %c0_i32 : i32
    %1 = arith.extui %0 : i1 to i32
    %c0_i32_0 = arith.constant 0 : i32
    %2 = arith.cmpi ne, %1, %c0_i32_0 : i32
    scf.if %2 {
      %cst_10 = arith.constant 0.000000e+00 : f32
      %12 = vector.broadcast %cst_10 : f32 to vector<16x64xf32>
      %c0_11 = arith.constant 0 : index
      %c0_12 = arith.constant 0 : index
      %13 = vector.load %arg7[%c0_11, %c0_12] : memref<16x64xf32, #tpu.memory_space<vmem>>, vector<16x64xf32>
      tpu.vector_store %arg7[%c0_11, %c0_12], %12 {strides = array<i32>} : memref<16x64xf32, #tpu.memory_space<vmem>>, vector<16x64xf32>,
    } else {
    }
    %c0 = arith.constant 0 : index
    %c0_1 = arith.constant 0 : index
    %3 = vector.load %arg7[%c0, %c0_1] : memref<16x64xf32, #tpu.memory_space<vmem>>, vector<16x64xf32>
    %c0_2 = arith.constant 0 : index
    %c0_3 = arith.constant 0 : index
    %4 = vector.load %arg3[%c0_2, %c0_3] : memref<16x32xbf16, #tpu.memory_space<vmem>>, vector<16x32xbf16>
    %c0_4 = arith.constant 0 : index
    %c0_5 = arith.constant 0 : index
    %5 = vector.load %arg4[%c0_4, %c0_5] : memref<32x64xbf16, #tpu.memory_space<vmem>>, vector<32x64xbf16>
    %cst = arith.constant dense<0.000000e+00> : vector<16x64xf32>
    %6 = tpu.matmul %4, %5, %cst {dimension_numbers = #tpu.dot_dimension_numbers<[1], [0], [0], [1], [0, 0, 1, 1], [], []>} : vector<16x32xbf16>, vector<32x64xbf16>, vector<16x64xf32> -> vector<16x64xf32>
    %7 = arith.addf %3, %6 : vector<16x64xf32>
    %c0_6 = arith.constant 0 : index
    %c0_7 = arith.constant 0 : index
    %8 = vector.load %arg7[%c0_6, %c0_7] : memref<16x64xf32, #tpu.memory_space<vmem>>, vector<16x64xf32>
    tpu.vector_store %arg7[%c0_6, %c0_7], %7 {strides = array<i32>} : memref<16x64xf32, #tpu.memory_space<vmem>>, vector<16x64xf32>,
    %c0_i32_8 = arith.constant 0 : i32
    %9 = arith.cmpi eq, %arg2, %c0_i32_8 : i32
    %10 = arith.extui %9 : i1 to i32
    %c0_i32_9 = arith.constant 0 : i32
    %11 = arith.cmpi ne, %10, %c0_i32_9 : i32
    scf.if %11 {
      %c0_10 = arith.constant 0 : index
      %c0_11 = arith.constant 0 : index
      %12 = vector.load %arg7[%c0_10, %c0_11] : memref<16x64xf32, #tpu.memory_space<vmem>>, vector<16x64xf32>
      %c0_12 = arith.constant 0 : index
      %c0_13 = arith.constant 0 : index
      %13 = vector.load %arg5[%c0_12, %c0_13] : memref<1x64xbf16, #tpu.memory_space<vmem>>, vector<1x64xbf16>
      %14 = arith.extf %13 : vector<1x64xbf16> to vector<1x64xf32>
      %15 = vector.broadcast %14 : vector<1x64xf32> to vector<16x64xf32>
      %16 = arith.addf %12, %15 : vector<16x64xf32>
      %17 = arith.truncf %16 : vector<16x64xf32> to vector<16x64xbf16>
      %c0_14 = arith.constant 0 : index
      %c0_15 = arith.constant 0 : index
      %18 = vector.load %arg6[%c0_14, %c0_15] : memref<16x64xbf16, #tpu.memory_space<vmem>>, vector<16x64xbf16>
      tpu.vector_store %arg6[%c0_14, %c0_15], %17 {strides = array<i32>} : memref<16x64xbf16, #tpu.memory_space<vmem>>, vector<16x64xbf16>,
    } else {
    }
    return
  }
  func.func @transform_0(%arg0: i32, %arg1: i32, %arg2: i32) -> (i32, i32) {
    %c0_i32 = arith.constant 0 : i32
    return %arg0, %arg2 : i32, i32
  }
  func.func @transform_1(%arg0: i32, %arg1: i32, %arg2: i32) -> (i32, i32) {
    %c0_i32 = arith.constant 0 : i32
    return %arg2, %arg1 : i32, i32
  }
  func.func @transform_2(%arg0: i32, %arg1: i32, %arg2: i32) -> (i32, i32) {
    %c0_i32 = arith.constant 0 : i32
    %c0_i32_0 = arith.constant 0 : i32
    return %c0_i32, %arg1 : i32, i32
  }
  func.func @transform_3(%arg0: i32, %arg1: i32, %arg2: i32) -> (i32, i32) {
    %c0_i32 = arith.constant 0 : i32
    return %arg0, %arg1 : i32, i32
  }
}

module attributes {stable_mosaic.version = 11 : i64} {
  func.func @_ffn_residual_ln_kernel(%arg0: i32, %arg1: i32, %arg2: memref<16x32xbf16, #tpu.memory_space<vmem>>, %arg3: memref<32x64xbf16, #tpu.memory_space<vmem>>, %arg4: memref<1x64xbf16, #tpu.memory_space<vmem>>, %arg5: memref<64x32xbf16, #tpu.memory_space<vmem>>, %arg6: memref<1x32xbf16, #tpu.memory_space<vmem>>, %arg7: memref<1x32xbf16, #tpu.memory_space<vmem>>, %arg8: memref<1x32xbf16, #tpu.memory_space<vmem>>, %arg9: memref<16x32xbf16, #tpu.memory_space<vmem>>, %arg10: memref<16x32xf32, #tpu.memory_space<vmem>>) attributes {dimension_semantics = [#tpu.dimension_semantics<parallel>, #tpu.dimension_semantics<arbitrary>], iteration_bounds = array<i64: 1, 1>, scalar_prefetch = 0 : i64, scratch_operands = 1 : i64, tpu.core_type = #tpu.core_type<tc>, window_params = [{transform_indices = @transform_0, window_bounds = array<i64: 16, 32>}, {transform_indices = @transform_1, window_bounds = array<i64: 32, 64>}, {transform_indices = @transform_2, window_bounds = array<i64: 1, 64>}, {transform_indices = @transform_3, window_bounds = array<i64: 64, 32>}, {pipeline_mode = #tpu.pipeline_mode<synchronous>, transform_indices = @transform_4, window_bounds = array<i64: 1, 32>}, {pipeline_mode = #tpu.pipeline_mode<synchronous>, transform_indices = @transform_5, window_bounds = array<i64: 1, 32>}, {pipeline_mode = #tpu.pipeline_mode<synchronous>, transform_indices = @transform_6, window_bounds = array<i64: 1, 32>}, {transform_indices = @transform_7, window_bounds = array<i64: 16, 32>}]} {
    %c0_i32 = arith.constant 0 : i32
    %0 = arith.cmpi eq, %arg1, %c0_i32 : i32
    %1 = arith.extui %0 : i1 to i32
    %c0_i32_0 = arith.constant 0 : i32
    %2 = arith.cmpi ne, %1, %c0_i32_0 : i32
    scf.if %2 {
      %cst_16 = arith.constant 0.000000e+00 : f32
      %21 = vector.broadcast %cst_16 : f32 to vector<16x32xf32>
      %c0_17 = arith.constant 0 : index
      %c0_18 = arith.constant 0 : index
      %22 = vector.load %arg10[%c0_17, %c0_18] : memref<16x32xf32, #tpu.memory_space<vmem>>, vector<16x32xf32>
      tpu.vector_store %arg10[%c0_17, %c0_18], %21 {strides = array<i32>} : memref<16x32xf32, #tpu.memory_space<vmem>>, vector<16x32xf32>,
    } else {
    }
    %c0 = arith.constant 0 : index
    %c0_1 = arith.constant 0 : index
    %3 = vector.load %arg2[%c0, %c0_1] : memref<16x32xbf16, #tpu.memory_space<vmem>>, vector<16x32xbf16>
    %c0_2 = arith.constant 0 : index
    %c0_3 = arith.constant 0 : index
    %4 = vector.load %arg3[%c0_2, %c0_3] : memref<32x64xbf16, #tpu.memory_space<vmem>>, vector<32x64xbf16>
    %cst = arith.constant dense<0.000000e+00> : vector<16x64xf32>
    %5 = tpu.matmul %3, %4, %cst {dimension_numbers = #tpu.dot_dimension_numbers<[1], [0], [0], [1], [0, 0, 1, 1], [], []>} : vector<16x32xbf16>, vector<32x64xbf16>, vector<16x64xf32> -> vector<16x64xf32>
    %c0_4 = arith.constant 0 : index
    %c0_5 = arith.constant 0 : index
    %6 = vector.load %arg4[%c0_4, %c0_5] : memref<1x64xbf16, #tpu.memory_space<vmem>>, vector<1x64xbf16>
    %7 = arith.extf %6 : vector<1x64xbf16> to vector<1x64xf32>
    %8 = vector.broadcast %7 : vector<1x64xf32> to vector<16x64xf32>
    %9 = arith.addf %5, %8 : vector<16x64xf32>
    %cst_6 = arith.constant 0.000000e+00 : f32
    %10 = vector.broadcast %cst_6 : f32 to vector<16x64xf32>
    %11 = arith.maximumf %9, %10 : vector<16x64xf32>
    %c0_7 = arith.constant 0 : index
    %c0_8 = arith.constant 0 : index
    %12 = vector.load %arg10[%c0_7, %c0_8] : memref<16x32xf32, #tpu.memory_space<vmem>>, vector<16x32xf32>
    %13 = arith.truncf %11 : vector<16x64xf32> to vector<16x64xbf16>
    %c0_9 = arith.constant 0 : index
    %c0_10 = arith.constant 0 : index
    %14 = vector.load %arg5[%c0_9, %c0_10] : memref<64x32xbf16, #tpu.memory_space<vmem>>, vector<64x32xbf16>
    %cst_11 = arith.constant dense<0.000000e+00> : vector<16x32xf32>
    %15 = tpu.matmul %13, %14, %cst_11 {dimension_numbers = #tpu.dot_dimension_numbers<[1], [0], [0], [1], [0, 0, 1, 1], [], []>} : vector<16x64xbf16>, vector<64x32xbf16>, vector<16x32xf32> -> vector<16x32xf32>
    %16 = arith.addf %12, %15 : vector<16x32xf32>
    %c0_12 = arith.constant 0 : index
    %c0_13 = arith.constant 0 : index
    %17 = vector.load %arg10[%c0_12, %c0_13] : memref<16x32xf32, #tpu.memory_space<vmem>>, vector<16x32xf32>
    tpu.vector_store %arg10[%c0_12, %c0_13], %16 {strides = array<i32>} : memref<16x32xf32, #tpu.memory_space<vmem>>, vector<16x32xf32>,
    %c0_i32_14 = arith.constant 0 : i32
    %18 = arith.cmpi eq, %arg1, %c0_i32_14 : i32
    %19 = arith.extui %18 : i1 to i32
    %c0_i32_15 = arith.constant 0 : i32
    %20 = arith.cmpi ne, %19, %c0_i32_15 : i32
    scf.if %20 {
      %c0_16 = arith.constant 0 : index
      %c0_17 = arith.constant 0 : index
      %21 = vector.load %arg10[%c0_16, %c0_17] : memref<16x32xf32, #tpu.memory_space<vmem>>, vector<16x32xf32>
      %c0_18 = arith.constant 0 : index
      %c0_19 = arith.constant 0 : index
      %22 = vector.load %arg6[%c0_18, %c0_19] : memref<1x32xbf16, #tpu.memory_space<vmem>>, vector<1x32xbf16>
      %23 = arith.extf %22 : vector<1x32xbf16> to vector<1x32xf32>
      %24 = vector.broadcast %23 : vector<1x32xf32> to vector<16x32xf32>
      %25 = arith.addf %21, %24 : vector<16x32xf32>
      %c0_20 = arith.constant 0 : index
      %c0_21 = arith.constant 0 : index
      %26 = vector.load %arg2[%c0_20, %c0_21] : memref<16x32xbf16, #tpu.memory_space<vmem>>, vector<16x32xbf16>
      %27 = arith.extf %26 : vector<16x32xbf16> to vector<16x32xf32>
      %28 = arith.addf %25, %27 : vector<16x32xf32>
      %cst_22 = arith.constant dense<0.000000e+00> : vector<16xf32>
      %29 = vector.multi_reduction <add>, %28, %cst_22 [1] : vector<16x32xf32> to vector<16xf32>
      %30 = vector.shape_cast %29 : vector<16xf32> to vector<16x1xf32>
      %cst_23 = arith.constant 3.200000e+01 : f32
      %31 = vector.broadcast %cst_23 : f32 to vector<16x1xf32>
      %32 = arith.divf %30, %31 : vector<16x1xf32>
      %33 = vector.broadcast %32 : vector<16x1xf32> to vector<16x32xf32>
      %34 = arith.subf %28, %33 : vector<16x32xf32>
      %35 = arith.mulf %34, %34 : vector<16x32xf32>
      %cst_24 = arith.constant dense<0.000000e+00> : vector<16xf32>
      %36 = vector.multi_reduction <add>, %35, %cst_24 [1] : vector<16x32xf32> to vector<16xf32>
      %37 = vector.shape_cast %36 : vector<16xf32> to vector<16x1xf32>
      %cst_25 = arith.constant 3.200000e+01 : f32
      %38 = vector.broadcast %cst_25 : f32 to vector<16x1xf32>
      %39 = arith.divf %37, %38 : vector<16x1xf32>
      %40 = vector.broadcast %32 : vector<16x1xf32> to vector<16x32xf32>
      %41 = arith.subf %28, %40 : vector<16x32xf32>
      %cst_26 = arith.constant 9.99999974E-6 : f32
      %42 = vector.broadcast %cst_26 : f32 to vector<16x1xf32>
      %43 = arith.addf %39, %42 : vector<16x1xf32>
      %44 = math.rsqrt %43 : vector<16x1xf32>
      %45 = vector.broadcast %44 : vector<16x1xf32> to vector<16x32xf32>
      %46 = arith.mulf %41, %45 : vector<16x32xf32>
      %c0_27 = arith.constant 0 : index
      %c0_28 = arith.constant 0 : index
      %47 = vector.load %arg7[%c0_27, %c0_28] : memref<1x32xbf16, #tpu.memory_space<vmem>>, vector<1x32xbf16>
      %48 = arith.extf %47 : vector<1x32xbf16> to vector<1x32xf32>
      %49 = vector.broadcast %48 : vector<1x32xf32> to vector<16x32xf32>
      %50 = arith.mulf %46, %49 : vector<16x32xf32>
      %c0_29 = arith.constant 0 : index
      %c0_30 = arith.constant 0 : index
      %51 = vector.load %arg8[%c0_29, %c0_30] : memref<1x32xbf16, #tpu.memory_space<vmem>>, vector<1x32xbf16>
      %52 = arith.extf %51 : vector<1x32xbf16> to vector<1x32xf32>
      %53 = vector.broadcast %52 : vector<1x32xf32> to vector<16x32xf32>
      %54 = arith.addf %50, %53 : vector<16x32xf32>
      %55 = arith.truncf %54 : vector<16x32xf32> to vector<16x32xbf16>
      %c0_31 = arith.constant 0 : index
      %c0_32 = arith.constant 0 : index
      %56 = vector.load %arg9[%c0_31, %c0_32] : memref<16x32xbf16, #tpu.memory_space<vmem>>, vector<16x32xbf16>
      tpu.vector_store %arg9[%c0_31, %c0_32], %55 {strides = array<i32>} : memref<16x32xbf16, #tpu.memory_space<vmem>>, vector<16x32xbf16>,
    } else {
    }
    return
  }
  func.func @transform_0(%arg0: i32, %arg1: i32) -> (i32, i32) {
    %c0_i32 = arith.constant 0 : i32
    %c0_i32_0 = arith.constant 0 : i32
    return %arg0, %c0_i32 : i32, i32
  }
  func.func @transform_1(%arg0: i32, %arg1: i32) -> (i32, i32) {
    %c0_i32 = arith.constant 0 : i32
    %c0_i32_0 = arith.constant 0 : i32
    return %c0_i32, %arg1 : i32, i32
  }
  func.func @transform_2(%arg0: i32, %arg1: i32) -> (i32, i32) {
    %c0_i32 = arith.constant 0 : i32
    %c0_i32_0 = arith.constant 0 : i32
    return %c0_i32, %arg1 : i32, i32
  }
  func.func @transform_3(%arg0: i32, %arg1: i32) -> (i32, i32) {
    %c0_i32 = arith.constant 0 : i32
    %c0_i32_0 = arith.constant 0 : i32
    return %arg1, %c0_i32 : i32, i32
  }
  func.func @transform_4(%arg0: i32, %arg1: i32) -> (i32, i32) {
    %c0_i32 = arith.constant 0 : i32
    %c0_i32_0 = arith.constant 0 : i32
    %c0_i32_1 = arith.constant 0 : i32
    return %c0_i32, %c0_i32_0 : i32, i32
  }
  func.func @transform_5(%arg0: i32, %arg1: i32) -> (i32, i32) {
    %c0_i32 = arith.constant 0 : i32
    %c0_i32_0 = arith.constant 0 : i32
    %c0_i32_1 = arith.constant 0 : i32
    return %c0_i32, %c0_i32_0 : i32, i32
  }
  func.func @transform_6(%arg0: i32, %arg1: i32) -> (i32, i32) {
    %c0_i32 = arith.constant 0 : i32
    %c0_i32_0 = arith.constant 0 : i32
    %c0_i32_1 = arith.constant 0 : i32
    return %c0_i32, %c0_i32_0 : i32, i32
  }
  func.func @transform_7(%arg0: i32, %arg1: i32) -> (i32, i32) {
    %c0_i32 = arith.constant 0 : i32
    %c0_i32_0 = arith.constant 0 : i32
    return %arg0, %c0_i32 : i32, i32
  }
}

</mosaic_0001>

<bundles_post_ra>
// kernel: closed_call.28
= control target key start
LH: loop header
LB: loop body
LE: loop exit
PB: predicated region body
PF: predicated region fallthrough
CT: control target
= control target key end

     0   :  { %vm19_vm0 = vcmask 261120   ;;  %v148_v0 = vmov 0.0   ;;  %vm149_vm1 = vmmov 0   ;;  %v103_v4 = vlaneseq  ;;  %s193_s1 = inlined_call_operand.vmem [shape: bf16[32,32], index: 1, kind: input, shape index: {}]   ;;  %s194_s0 = inlined_call_operand.vmem [shape: bf16[16,32], index: 0, kind: input, shape index: {}]   ;;  %s195_s2 = inlined_call_operand.vmem [shape: bf16[1,32], index: 2, kind: input, shape index: {}]   ;;  %s196_s3 = inlined_call_operand.vmem [shape: bf16[16,32], index: 3, kind: output, shape index: {}]  }
   0x1   :  { %135 = vmatprep.subr.bf16.mxu0 %v148_v0  ;;  %v145_v1 = vld [vmem:[%s193_s1] sm:$0xff]   ;;  %139 = vmatprep.mubr.msk.bf16.mxu0 %vm149_vm1, %v148_v0  ;;  %20 = vst.msk [vmem:[#allocation2] sm:$0xff] %vm19_vm0, %v148_v0  ;;  %21 = vst.msk [vmem:[#allocation2 + $0x8] sm:$0xff] %vm19_vm0, %v148_v0  ;;  %v146_v2 = vld [vmem:[%s193_s1 + $0x8] sm:$0xff]   ;;  %vm117_vm2 = vcmask 257024  }
   0x2   :  { %136 = vmatpush3.bf16.msra.mxu0 %v145_v1  ;;  %v147_v3 = vld [vmem:[%s194_s0] sm:$0xff]   ;;  %v104_v6 = vshrl.u32 %v103_v4, 7 }
   0x3   :  { %137 = vmatprep.subr.bf16.mxu0 %v148_v0  ;;  %v101_v8 = vld [vmem:[%s195_s2] sm:$0x1] }
   0x4   :  { %v102_v13 = vunpack.c.l.bf16 %v101_v8  ;;  %v105_v14 = vsub.s32 0, %v104_v6 }
   0x6   :  { %138 = vmatpush3.bf16.msra.mxu0 %v146_v2  ;;  %v106_v17 = vrot.slane %v102_v13, %v105_v14 }
   0x8   :  { %v22_v5 = vld [vmem:[#allocation2] sm:$0xff]  ;;  %v23_v9 = vld [vmem:[#allocation2 + $0x8] sm:$0xff] }
   0x9   :  { %140 = vmatmul.mubr.msk.bf16.vlgmr.msra.gmra.mrb[0].mxu0 %vm19_vm0, %v147_v3 }
  0xdc   :  { %v85_v7 = vpop.f32.mrb[0].mxu0 }
  0xdd   :  { %v92_v10 = vadd.f32 %v85_v7, %v22_v5  ;;  %v141_v11 = vpop.f32.mrb[1].mxu0 }
  0xde   :  { %v88_v12 = vpop.f32.mrb[2].mxu0 }
  0xdf   :  { %94 = vst.msk [vmem:[#allocation2] sm:$0xff] %vm19_vm0, %v92_v10  ;;  %v93_v15 = vadd.f32 %v88_v12, %v23_v9  ;;  %v142_v16 = vpop.f32.mrb[3].mxu0 }
  0xe1   :  { %95 = vst.msk [vmem:[#allocation2 + $0x8] sm:$0xff] %vm19_vm0, %v93_v15 }
  0xe6   :  { %v99_v18 = vld [vmem:[#allocation2] sm:$0xff] }
  0xe7   :  { %v107_v19 = vadd.f32 %v106_v17, %v99_v18 }
  0xe8   :  { %v100_v20 = vld [vmem:[#allocation2 + $0x8] sm:$0xff] }
  0xe9   :  { %v130_v21 = vpack.c.bf16 %v107_v19, %v107_v19  ;;  %v108_v22 = vadd.f32 %v106_v17, %v100_v20 }
  0xeb   :  { %118 = vst.msk [vmem:[%s196_s3] sm:$0xf] %vm117_vm2, %v130_v21  ;;  %v131_v23 = vpack.c.bf16 %v108_v22, %v108_v22 }
  0xed   :  { %119 = vst.msk [vmem:[%s196_s3 + $0x4] sm:$0xf] %vm117_vm2, %v131_v23 }

// kernel: closed_call.27
= control target key start
LH: loop header
LB: loop body
LE: loop exit
PB: predicated region body
PF: predicated region fallthrough
CT: control target
= control target key end

     0   :  { %vm28_vm0 = vcmask 261120   ;;  %v214_v0 = vmov 0.0   ;;  %vm215_vm1 = vmmov 0   ;;  %v112_v4 = vlaneseq  ;;  %s287_s1 = inlined_call_operand.vmem [shape: bf16[32,32], index: 1, kind: input, shape index: {}]   ;;  %s288_s0 = inlined_call_operand.vmem [shape: bf16[16,32], index: 0, kind: input, shape index: {}]   ;;  %s289_s2 = inlined_call_operand.vmem [shape: bf16[1,32], index: 2, kind: input, shape index: {}]   ;;  %s290_s3 = inlined_call_operand.vmem [shape: bf16[16,32], index: 3, kind: input, shape index: {}]   ;;  %s291_s4 = inlined_call_operand.vmem [shape: bf16[1,32], index: 4, kind: input, shape index: {}]   ;;  %s292_s5 = inlined_call_operand.vmem [shape: bf16[1,32], index: 5, kind: input, shape index: {}]   ;;  %s293_s6 = inlined_call_operand.vmem [shape: bf16[16,32], index: 6, kind: output, shape index: {}]  }
   0x1   :  { %197 = vmatprep.subr.bf16.mxu0 %v214_v0  ;;  %v207_v1 = vld [vmem:[%s287_s1] sm:$0xff]   ;;  %201 = vmatprep.mubr.msk.bf16.mxu0 %vm215_vm1, %v214_v0  ;;  %29 = vst.msk [vmem:[#allocation2] sm:$0xff] %vm28_vm0, %v214_v0  ;;  %30 = vst.msk [vmem:[#allocation2 + $0x8] sm:$0xff] %vm28_vm0, %v214_v0  ;;  %v208_v2 = vld [vmem:[%s287_s1 + $0x8] sm:$0xff]   ;;  %vm175_vm2 = vcmask 257024  }
   0x2   :  { %198 = vmatpush3.bf16.msra.mxu0 %v207_v1  ;;  %v209_v3 = vld [vmem:[%s288_s0] sm:$0xff]   ;;  %v113_v6 = vshrl.u32 %v112_v4, 7 }
   0x3   :  { %199 = vmatprep.subr.bf16.mxu0 %v214_v0  ;;  %v110_v9 = vld [vmem:[%s289_s2] sm:$0x1] }
   0x4   :  { %v111_v15 = vunpack.c.l.bf16 %v110_v9  ;;  %v114_v16 = vsub.s32 0, %v113_v6  ;;  %v191_v17 = vld [vmem:[%s290_s3] sm:$0xff]  }
   0x5   :  { %v192_v19 = vunpack.c.l.bf16 %v191_v17  ;;  %v193_v22 = vunpack.c.h.bf16 %v191_v17  ;;  %v151_v44 = vld [vmem:[%s291_s4] sm:$0x1] }
   0x6   :  { %200 = vmatpush3.bf16.msra.mxu0 %v208_v2  ;;  %v115_v18 = vrot.slane %v111_v15, %v114_v16  ;;  %v159_v46 = vld [vmem:[%s292_s5] sm:$0x1]  ;;  %v152_v47 = vunpack.c.l.bf16 %v151_v44 }
   0x7   :  { %v160_v48 = vunpack.c.l.bf16 %v159_v46 }
   0x8   :  { %v31_v5 = vld [vmem:[#allocation2] sm:$0xff]  ;;  %v32_v8 = vld [vmem:[#allocation2 + $0x8] sm:$0xff]  ;;  %v156_v49 = vrot.slane %v152_v47, %v114_v16 }
   0x9   :  { %202 = vmatmul.mubr.msk.bf16.vlgmr.msra.gmra.mrb[0].mxu0 %vm28_vm0, %v209_v3  ;;  %v164_v51 = vrot.slane %v160_v48, %v114_v16 }
  0xdc   :  { %v94_v7 = vpop.f32.mrb[0].mxu0 }
  0xdd   :  { %v101_v10 = vadd.f32 %v94_v7, %v31_v5  ;;  %v203_v11 = vpop.f32.mrb[1].mxu0 }
  0xde   :  { %v97_v12 = vpop.f32.mrb[2].mxu0 }
  0xdf   :  { %103 = vst.msk [vmem:[#allocation2] sm:$0xff] %vm28_vm0, %v101_v10  ;;  %v102_v13 = vadd.f32 %v97_v12, %v32_v8  ;;  %v204_v14 = vpop.f32.mrb[3].mxu0 }
  0xe1   :  { %104 = vst.msk [vmem:[#allocation2 + $0x8] sm:$0xff] %vm28_vm0, %v102_v13 }
  0xe6   :  { %v108_v20 = vld [vmem:[#allocation2] sm:$0xff] }
  0xe7   :  { %v116_v21 = vadd.f32 %v115_v18, %v108_v20 }
  0xe8   :  { %v109_v23 = vld [vmem:[#allocation2 + $0x8] sm:$0xff] }
  0xe9   :  { %v122_v24 = vadd.f32 %v192_v19, %v116_v21  ;;  %v117_v25 = vadd.f32 %v115_v18, %v109_v23 }
  0xeb   :  { %v124_v26 = vsel %vm28_vm0, %v122_v24, 0.0  ;;  %v123_v27 = vadd.f32 %v193_v22, %v117_v25 }
  0xec   :  { %125 = vadd.xlane.f32.xlu0 %v124_v26 }
  0xed   :  { %v127_v28 = vsel %vm28_vm0, %v123_v27, 0.0 }
  0xf0   :  { %128 = vadd.xlane.f32.xlu0 %v127_v28 }
 0x179   :  { %v126_v29 = vpop.xlane.xlu0 %125 }
 0x17a   :  { %v131_v30 = vmul.f32 0.03125, %v126_v29 }
 0x17c   :  { %v133_v31 = vsub.f32 %v122_v24, %v131_v30 }
 0x17d   :  { %v129_v32 = vpop.xlane.xlu0 %128 }
 0x17e   :  { %v132_v33 = vmul.f32 0.03125, %v129_v32  ;;  %v135_v34 = vmul.f32 %v133_v31, %v133_v31 }
 0x180   :  { %v134_v35 = vsub.f32 %v123_v27, %v132_v33  ;;  %v137_v36 = vsel %vm28_vm0, %v135_v34, 0.0 }
 0x181   :  { %138 = vadd.xlane.f32.xlu1 %v137_v36 }
 0x182   :  { %v136_v37 = vmul.f32 %v134_v35, %v134_v35 }
 0x184   :  { %v140_v38 = vsel %vm28_vm0, %v136_v37, 0.0 }
 0x185   :  { %141 = vadd.xlane.f32.xlu1 %v140_v38 }
 0x20e   :  { %v139_v39 = vpop.xlane.xlu1 %138 }
 0x20f   :  { %v143_v40 = vmul.f32 0.03125, %v139_v39 }
 0x211   :  { %v145_v41 = vadd.f32 1e-05, %v143_v40 }
 0x212   :  { %v142_v42 = vpop.xlane.xlu1 %141 }
 0x213   :  { %210 = vrsqrt.f32 %v145_v41  ;;  %v144_v43 = vmul.f32 0.03125, %v142_v42 }
 0x215   :  { %v146_v45 = vadd.f32 1e-05, %v144_v43 }
 0x217   :  { %212 = vrsqrt.f32 %v146_v45 }
 0x21d   :  { %v211_v50 = vpop.eup %210 }
 0x21e   :  { %v149_v52 = vmul.f32 %v211_v50, %v133_v31 }
 0x220   :  { %v157_v53 = vmul.f32 %v156_v49, %v149_v52 }
 0x221   :  { %v213_v54 = vpop.eup %212 }
 0x222   :  { %v165_v55 = vadd.f32 %v164_v51, %v157_v53  ;;  %v150_v56 = vmul.f32 %v213_v54, %v134_v35 }
 0x224   :  { %v188_v57 = vpack.c.bf16 %v165_v55, %v165_v55  ;;  %v158_v58 = vmul.f32 %v156_v49, %v150_v56 }
 0x226   :  { %176 = vst.msk [vmem:[%s293_s6] sm:$0xf] %vm175_vm2, %v188_v57  ;;  %v166_v59 = vadd.f32 %v164_v51, %v158_v58 }
 0x228   :  { %v189_v60 = vpack.c.bf16 %v166_v59, %v166_v59 }
 0x22a   :  { %177 = vst.msk [vmem:[%s293_s6 + $0x4] sm:$0xf] %vm175_vm2, %v189_v60 }

// kernel: closed_call.25
= control target key start
LH: loop header
LB: loop body
LE: loop exit
PB: predicated region body
PF: predicated region fallthrough
CT: control target
= control target key end

     0   :  { %vm19_vm0 = vcmask 785408   ;;  %v149_v0 = vmov 0.0   ;;  %vm150_vm1 = vmmov 0   ;;  %vm47_vm2 = vcmask 261120   ;;  %s193_s1 = inlined_call_operand.vmem [shape: bf16[32,96], index: 1, kind: input, shape index: {}]   ;;  %s194_s0 = inlined_call_operand.vmem [shape: bf16[16,32], index: 0, kind: input, shape index: {}]   ;;  %s195_s2 = inlined_call_operand.vmem [shape: bf16[1,96], index: 2, kind: input, shape index: {}]   ;;  %s196_s3 = inlined_call_operand.vmem [shape: bf16[16,96], index: 3, kind: output, shape index: {}]  }
   0x1   :  { %136 = vmatprep.subr.bf16.mxu0 %v149_v0  ;;  %v146_v1 = vld [vmem:[%s193_s1] sm:$0xff]   ;;  %140 = vmatprep.mubr.msk.bf16.mxu0 %vm150_vm1, %v149_v0  ;;  %20 = vst.msk [vmem:[#allocation2] sm:$0xff] %vm19_vm0, %v149_v0  ;;  %21 = vst.msk [vmem:[#allocation2 + $0x8] sm:$0xff] %vm19_vm0, %v149_v0  ;;  %v147_v2 = vld [vmem:[%s193_s1 + $0x8] sm:$0xff]   ;;  %v104_v4 = vlaneseq  ;;  %vm118_vm3 = vcmask 781312  }
   0x2   :  { %137 = vmatpush3.bf16.msra.mxu0 %v146_v1  ;;  %v148_v3 = vld [vmem:[%s194_s0] sm:$0xff]  }
   0x3   :  { %138 = vmatprep.subr.bf16.mxu0 %v149_v0  ;;  %v105_v6 = vshrl.u32 %v104_v4, 7  ;;  %v102_v8 = vld [vmem:[%s195_s2] sm:$0x1] }
   0x4   :  { %v103_v13 = vunpack.c.l.bf16 %v102_v8 }
   0x5   :  { %v106_v14 = vsub.s32 0, %v105_v6 }
   0x6   :  { %139 = vmatpush3.bf16.msra.mxu0 %v147_v2 }
   0x7   :  { %v107_v17 = vrot.slane %v103_v13, %v106_v14 }
   0x8   :  { %v22_v5 = vld [vmem:[#allocation2] sm:$0xff]  ;;  %v23_v9 = vld [vmem:[#allocation2 + $0x8] sm:$0xff] }
   0x9   :  { %141 = vmatmul.mubr.msk.bf16.vlgmr.msra.gmra.mrb[0].mxu0 %vm47_vm2, %v148_v3 }
  0xdc   :  { %v85_v7 = vpop.f32.mrb[0].mxu0 }
  0xdd   :  { %v92_v10 = vadd.f32 %v85_v7, %v22_v5  ;;  %v142_v11 = vpop.f32.mrb[1].mxu0 }
  0xde   :  { %v88_v12 = vpop.f32.mrb[2].mxu0 }
  0xdf   :  { %95 = vst.msk [vmem:[#allocation2] sm:$0xff] %vm19_vm0, %v92_v10  ;;  %v93_v15 = vadd.f32 %v88_v12, %v23_v9  ;;  %v143_v16 = vpop.f32.mrb[3].mxu0 }
  0xe1   :  { %96 = vst.msk [vmem:[#allocation2 + $0x8] sm:$0xff] %vm19_vm0, %v93_v15 }
  0xe6   :  { %v100_v18 = vld [vmem:[#allocation2] sm:$0xff] }
  0xe7   :  { %v108_v19 = vadd.f32 %v107_v17, %v100_v18 }
  0xe8   :  { %v101_v20 = vld [vmem:[#allocation2 + $0x8] sm:$0xff] }
  0xe9   :  { %v131_v21 = vpack.c.bf16 %v108_v19, %v108_v19  ;;  %v109_v22 = vadd.f32 %v107_v17, %v101_v20 }
  0xeb   :  { %119 = vst.msk [vmem:[%s196_s3] sm:$0xf] %vm118_vm3, %v131_v21  ;;  %v132_v23 = vpack.c.bf16 %v109_v22, %v109_v22 }
  0xed   :  { %120 = vst.msk [vmem:[%s196_s3 + $0x4] sm:$0xf] %vm118_vm3, %v132_v23 }

// kernel: closed_call.26
= control target key start
LH: loop header
LB: loop body
LE: loop exit
PB: predicated region body
PF: predicated region fallthrough
CT: control target
= control target key end

     0   :  { %s916_s12 = smov 0   ;;  %s1029_s0 = inlined_call_operand.vmem [shape: bf16[2,8,32], index: 0, kind: input, shape index: {}]   ;;  %s1030_s1 = inlined_call_operand.vmem [shape: bf16[2,8,32], index: 1, kind: input, shape index: {}]   ;;  %s1031_s2 = inlined_call_operand.vmem [shape: bf16[2,8,32], index: 2, kind: input, shape index: {}]   ;;  %s1032_s3 = inlined_call_operand.vmem [shape: bf16[2,8,32], index: 3, kind: output, shape index: {}]  }
   0x1 LB: > { %s759_s13 = sadd.s32 4294967295, %s886_s12   ;;  %p763_p0 = scmp.ge.s32.totalorder %s886_s12, 1  ;;  %s886_s12 = sphi %s916_s12, %s13_s12  }
   0x2   : > { %p154_p1 = scmp.lt.s32.totalorder %s886_s12, 3 }
   0x4   : > { %p155_p2 = pnand %p763_p0, %p154_p1 }
   0x5   : > { %p184_p3 = scmp.lt.s32.totalorder (!%p155_p2), %s759_s13, 1  ;;  %v888_v0 = vmov (!%p155_p2), 0.0   ;;  %vm889_vm0 = vmmov (!%p155_p2), 0   ;;  %vm209_vm1 = vcmask (!%p155_p2), 64512   ;;  %v204_v4 = vlaneseq (!%p155_p2)  ;;  %s890_s21 = smov (!%p155_p2), 120  }
   0x6   : > { %158 = sbr.rel (%p155_p2) target bundleno = 1479 (0x5c7), region = 32  ;;  %797 = vmatprep.subr.bf16.mxu0 (!%p155_p2), %v888_v0  ;;  %799 = vmatprep.mubr.msk.bf16.mxu0 (!%p155_p2), %vm889_vm0, %v888_v0  ;;  %s891_s22 = smov (!%p155_p2), 112   ;;  %vm273_vm3 = vcmask (!%p155_p2), 1043456   ;;  %vm675_vm4 = vcmask (!%p155_p2), 130048   ;;  %vm677_vm5 = vcmask (!%p155_p2), 195584   ;;  %vm680_vm6 = vcmask (!%p155_p2), 257024  }
   0x7   : > { %803 = vmatprep.subr.bf16.mxu1 (!%p155_p2), %v888_v0  ;;  %805 = vmatprep.mubr.msk.bf16.mxu1 (!%p155_p2), %vm889_vm0, %v888_v0  ;;  %v945_v5 = vshrl.u32 (!%p155_p2), %v204_v4, 7  ;;  %v947_v6 = vand.u32 (!%p155_p2), 127, %v204_v4  ;;  %s892_s23 = smov (!%p155_p2), 104   ;;  %s893_s27 = smov (!%p155_p2), 8  }
   0x8   : > { %s894_s28 = smov (!%p155_p2), 16   ;;  %s895_s29 = smov (!%p155_p2), 24  }
   0x9   : > { %vm208_vm2 = vcmp.ge.s32.totalorder (!%p155_p2), %v945_v5, %v947_v6 }
   0xd   : > { %s1034_s13 = smov (!%p184_p3, %s759_s13), 1 }
   0xe   : > { %s930_s14 = sshll.u32 %s1034_s13, 2 }
   0xf   : > { %s191_s17 = scalar_lea.vmem %s1030_s1, %s930_s14  ;;  %s187_s20 = scalar_lea.vmem %s1029_s0, %s930_s14 }
  0x10   : > { %v202_v1 = vld [vmem:[%s191_s17] sm:$0xf]  ;;  %s195_s26 = scalar_lea.vmem %s1031_s2, %s930_s14  ;;  %s199_s5 = scalar_lea.vmem %s1032_s3, %s930_s14 }
  0x11   : > { %v214_v2 = vsel %vm209_vm1, %v202_v1, 0  ;;  %v201_v3 = vld [vmem:[%s187_s20] sm:$0xf]  ;;  %v771_v14 = vcombine.low %v202_v1, %v202_v1 }
  0x12   : > { %798 = vmatpush3.bf16.xpose.msra.mxu0 %v214_v2  ;;  %v770_v15 = vcombine.low %v201_v3, %v201_v3  ;;  %v965_v21 = vld [vmem:[%s195_s26] sm:$0xf] }
  0x13   : > { %815 = vmatprep.subr.bf16.mxu0 %v888_v0  ;;  %325 = vrot.lane.b32.xlu1 %v771_v14, %s890_s21  ;;  %v275_v22 = vsel %vm273_vm3, %v965_v21, 0  ;;  %v773_v6 = vcombine.low %v965_v21, %v965_v21 }
  0x14   : > { %804 = vmatpush3.bf16.msra.mxu1 %v275_v22 }
  0x15   : > { %809 = vmatprep.subr.bf16.mxu1 %v888_v0 }
  0x17   : > { %320 = vrot.lane.b32.xlu1 %v770_v15, %s890_s21 }
  0x19   : > { %800 = vmatmul.mubr.msk.bf16.vlgmr.msra.gmra.mrb[0].mxu0 %vm209_vm1, %v201_v3 }
  0x1a   : > { %817 = vmatprep.mubr.msk.bf16.mxu0 %vm889_vm0, %v888_v0 }
  0x1b   : > { %438 = vrot.lane.b32.xlu1 %v770_v15, %s891_s22 }
  0x1f   : > { %552 = vrot.lane.b32.xlu1 %v771_v14, %s892_s23 }
  0x23   : > { %550 = vrot.lane.b32.xlu1 %v770_v15, %s892_s23 }
  0x85   : > { %v326_v25 = vpop.permute.xlu1 %325 }
  0x86   : > { %v331_v27 = vsel %vm209_vm1, %v326_v25, 0 }
  0x89   : > { %v321_v29 = vpop.permute.xlu1 %320 }
  0x8d   : > { %v439_v31 = vpop.permute.xlu1 %438 }
  0x91   : > { %v553_v33 = vpop.permute.xlu1 %552 }
  0x92   : > { %v558_v34 = vsel %vm209_vm1, %v553_v33, 0 }
  0x95   : > { %v551_v35 = vpop.permute.xlu1 %550 }
  0xec   : > { %v250_v7 = vpop.f32.mrb[0].mxu0 }
  0xed   : > { %v256_v8 = vmul.f32 0.35355338, %v250_v7  ;;  %v801_v9 = vpop.f32.mrb[1].mxu0 }
  0xee   : > { %v253_v10 = vpop.f32.mrb[2].mxu0 }
  0xef   : > { %v802_v11 = vpop.f32.mrb[3].mxu0  ;;  %v257_v12 = vsel %vm208_vm2, %v256_v8, -1e+30 }
  0xf0   : > { %v258_v13 = vsel %vm209_vm1, %v257_v12, -inf }
  0xf1   : > { %259 = vmax.xlane.f32.xlu0 %v258_v13 }
 0x17e   : > { %v260_v16 = vpop.xlane.xlu0 %259 }
 0x17f   : > { %v261_v17 = vsub.f32 %v257_v12, %v260_v16 }
 0x181   : > { %v262_v18 = vmul.f32 1.442695, %v261_v17 }
 0x183   : > { %864 = vpow2.f32 %v262_v18 }
 0x18d   : > { %v865_v19 = vpop.eup %864 }
 0x18e   : > { %v264_v20 = vsel %vm209_vm1, %v865_v19, 0.0 }
 0x18f   : > { %265 = vadd.xlane.f32.xlu0 %v264_v20 }
 0x1a5   : > { %440 = vrot.lane.b32.xlu0 %v771_v14, %s891_s22 }
 0x21c   : > { %v266_v23 = vpop.xlane.xlu0 %265 }
 0x21d   : > { %866 = vrcp.f32 %v266_v23 }
 0x220   : > { %v441_v30 = vpop.permute.xlu0 %440 }
 0x221   : > { %v446_v32 = vsel %vm209_vm1, %v441_v30, 0 }
 0x227   : > { %v867_v24 = vpop.eup %866 }
 0x228   : > { %v268_v26 = vmul.f32 %v867_v24, %v865_v19 }
 0x22a   : > { %v269_v28 = vpack.c.bf16 %v268_v26, %v268_v26 }
 0x22c   : > { %806 = vmatmul.mubr.msk.bf16.vlgmr.msra.gmra.mrb[0].mxu1 %vm209_vm1, %v269_v28 }
 0x22d   : > { %810 = vmatpush3.bf16.xpose.msra.mxu1 %v331_v27  ;;  %811 = vmatprep.mubr.msk.bf16.mxu1 %vm889_vm0, %v888_v0 }
 0x22e   : > { %821 = vmatprep.subr.bf16.mxu1 %v888_v0 }
 0x234   : > { %812 = vmatmul.mubr.msk.bf16.vlgmr.msra.gmra.mrb[4].mxu1 %vm209_vm1, %v321_v29 }
 0x235   : > { %822 = vmatpush3.bf16.xpose.msra.mxu1 %v446_v32  ;;  %823 = vmatprep.mubr.msk.bf16.mxu1 %vm889_vm0, %v888_v0 }
 0x236   : > { %833 = vmatprep.subr.bf16.mxu1 %v888_v0 }
 0x23c   : > { %824 = vmatmul.mubr.msk.bf16.vlgmr.msra.gmra.mrb[8].mxu1 %vm209_vm1, %v439_v31 }
 0x23d   : > { %834 = vmatpush3.bf16.xpose.msra.mxu1 %v558_v34  ;;  %835 = vmatprep.mubr.msk.bf16.mxu1 %vm889_vm0, %v888_v0 }
 0x244   : > { %836 = vmatmul.mubr.msk.bf16.vlgmr.msra.gmra.mrb[12].mxu1 %vm209_vm1, %v551_v35 }
 0x2ff   : > { %v986_v36 = vpop.f32.mrb[0].mxu1 }
 0x300   : > { %v807_v37 = vpop.f32.mrb[1].mxu1 }
 0x301   : > { %v314_v38 = vpop.f32.mrb[2].mxu1 }
 0x302   : > { %v808_v39 = vpop.f32.mrb[3].mxu1 }
 0x307   : > { %v367_v40 = vpop.f32.mrb[4].mxu1 }
 0x308   : > { %v373_v41 = vmul.f32 0.35355338, %v367_v40  ;;  %v813_v42 = vpop.f32.mrb[5].mxu1 }
 0x309   : > { %v370_v43 = vpop.f32.mrb[6].mxu1 }
 0x30a   : > { %v814_v44 = vpop.f32.mrb[7].mxu1  ;;  %v374_v45 = vsel %vm208_vm2, %v373_v41, -1e+30 }
 0x30b   : > { %v375_v46 = vsel %vm209_vm1, %v374_v45, -inf }
 0x30c   : > { %376 = vmax.xlane.f32.xlu1 %v375_v46 }
 0x30f   : > { %v482_v47 = vpop.f32.mrb[8].mxu1 }
 0x310   : > { %v488_v48 = vmul.f32 0.35355338, %v482_v47  ;;  %v825_v49 = vpop.f32.mrb[9].mxu1 }
 0x311   : > { %v485_v50 = vpop.f32.mrb[10].mxu1 }
 0x312   : > { %v489_v51 = vsel %vm208_vm2, %v488_v48, -1e+30  ;;  %v826_v52 = vpop.f32.mrb[11].mxu1 }
 0x313   : > { %v490_v53 = vsel %vm209_vm1, %v489_v51, -inf }
 0x314   : > { %491 = vmax.xlane.f32.xlu0 %v490_v53 }
 0x317   : > { %v594_v54 = vpop.f32.mrb[12].mxu1 }
 0x318   : > { %v600_v55 = vmul.f32 0.35355338, %v594_v54  ;;  %v837_v56 = vpop.f32.mrb[13].mxu1 }
 0x319   : > { %v597_v57 = vpop.f32.mrb[14].mxu1 }
 0x31a   : > { %v601_v58 = vsel %vm208_vm2, %v600_v55, -1e+30  ;;  %v838_v59 = vpop.f32.mrb[15].mxu1 }
 0x31b   : > { %v602_v60 = vsel %vm209_vm1, %v601_v58, -inf }
 0x31c   : > { %603 = vmax.xlane.f32.xlu1 %v602_v60 }
 0x399   : > { %v377_v61 = vpop.xlane.xlu1 %376 }
 0x39a   : > { %v378_v62 = vsub.f32 %v374_v45, %v377_v61 }
 0x39c   : > { %v379_v63 = vmul.f32 1.442695, %v378_v62 }
 0x39e   : > { %868 = vpow2.f32 %v379_v63 }
 0x3a1   : > { %v492_v1 = vpop.xlane.xlu0 %491 }
 0x3a2   : > { %v493_v2 = vsub.f32 %v489_v51, %v492_v1 }
 0x3a4   : > { %v494_v3 = vmul.f32 1.442695, %v493_v2 }
 0x3a6   : > { %870 = vpow2.f32 %v494_v3 }
 0x3a8   : > { %v869_v4 = vpop.eup %868 }
 0x3a9   : > { %v381_v7 = vsel %vm209_vm1, %v869_v4, 0.0  ;;  %v604_v9 = vpop.xlane.xlu1 %603 }
 0x3aa   : > { %382 = vadd.xlane.f32.xlu1 %v381_v7  ;;  %v605_v10 = vsub.f32 %v601_v58, %v604_v9 }
 0x3ac   : > { %v606_v11 = vmul.f32 1.442695, %v605_v10 }
 0x3ae   : > { %872 = vpow2.f32 %v606_v11 }
 0x3b0   : > { %v871_v8 = vpop.eup %870 }
 0x3b1   : > { %v496_v5 = vsel %vm209_vm1, %v871_v8, 0.0 }
 0x3b2   : > { %497 = vadd.xlane.f32.xlu0 %v496_v5 }
 0x3b8   : > { %v873_v12 = vpop.eup %872 }
 0x3b9   : > { %v608_v13 = vsel %vm209_vm1, %v873_v12, 0.0 }
 0x3bb   : > { %502 = vrot.lane.b32.xlu1 %v773_v6, %s891_s22 }
 0x3c8   : > { %390 = vrot.lane.b32.xlu0 %v773_v6, %s890_s21 }
 0x3df   : > { %609 = vadd.xlane.f32.xlu1 %v608_v13 }
 0x3f0   : > { %614 = vrot.lane.b32.xlu1 %v773_v6, %s892_s23 }
 0x437   : > { %v383_v14 = vpop.xlane.xlu1 %382 }
 0x438   : > { %874 = vrcp.f32 %v383_v14 }
 0x43b   : > { %v503_v20 = vpop.permute.xlu1 %502 }
 0x43c   : > { %v508_v22 = vsel %vm273_vm3, %v503_v20, 0 }
 0x43f   : > { %v498_v15 = vpop.xlane.xlu0 %497 }
 0x440   : > { %876 = vrcp.f32 %v498_v15 }
 0x442   : > { %v875_v16 = vpop.eup %874 }
 0x443   : > { %v385_v17 = vmul.f32 %v875_v16, %v869_v4  ;;  %v391_v18 = vpop.permute.xlu0 %390 }
 0x444   : > { %v396_v19 = vsel %vm273_vm3, %v391_v18, 0 }
 0x445   : > { %816 = vmatpush3.bf16.msra.mxu0 %v396_v19  ;;  %v386_v21 = vpack.c.bf16 %v385_v17, %v385_v17 }
 0x446   : > { %827 = vmatprep.subr.bf16.mxu0 %v888_v0 }
 0x448   : > { %818 = vmatmul.mubr.msk.bf16.vlgmr.msra.gmra.mrb[4].mxu0 %vm209_vm1, %v386_v21 }
 0x449   : > { %828 = vmatpush3.bf16.msra.mxu0 %v508_v22  ;;  %829 = vmatprep.mubr.msk.bf16.mxu0 %vm889_vm0, %v888_v0 }
 0x44a   : > { %v877_v23 = vpop.eup %876  ;;  %839 = vmatprep.subr.bf16.mxu0 %v888_v0 }
 0x44b   : > { %v500_v24 = vmul.f32 %v877_v23, %v871_v8 }
 0x44d   : > { %v501_v25 = vpack.c.bf16 %v500_v24, %v500_v24 }
 0x450   : > { %830 = vmatmul.mubr.msk.bf16.vlgmr.msra.gmra.mrb[8].mxu0 %vm209_vm1, %v501_v25 }
 0x451   : > { %841 = vmatprep.mubr.msk.bf16.mxu0 %vm889_vm0, %v888_v0 }
 0x46c   : > { %v610_v26 = vpop.xlane.xlu1 %609 }
 0x46d   : > { %878 = vrcp.f32 %v610_v26 }
 0x470   : > { %v615_v27 = vpop.permute.xlu1 %614 }
 0x471   : > { %v620_v28 = vsel %vm273_vm3, %v615_v27, 0 }
 0x472   : > { %840 = vmatpush3.bf16.msra.mxu0 %v620_v28 }
 0x477   : > { %v879_v29 = vpop.eup %878 }
 0x478   : > { %v612_v30 = vmul.f32 %v879_v29, %v873_v12 }
 0x47a   : > { %v613_v31 = vpack.c.bf16 %v612_v30, %v612_v30 }
 0x47c   : > { %842 = vmatmul.mubr.msk.bf16.vlgmr.msra.gmra.mrb[12].mxu0 %vm209_vm1, %v613_v31 }
 0x51b   : > { %v432_v32 = vpop.f32.mrb[4].mxu0 }
 0x51c   : > { %663 = vrot.lane.b32.xlu0 %v432_v32, %s893_s27  ;;  %v819_v33 = vpop.f32.mrb[5].mxu0 }
 0x51d   : > { %v435_v34 = vpop.f32.mrb[6].mxu0 }
 0x51e   : > { %v820_v35 = vpop.f32.mrb[7].mxu0 }
 0x523   : > { %v544_v37 = vpop.f32.mrb[8].mxu0 }
 0x524   : > { %667 = vrot.lane.b32.xlu1 %v544_v37, %s894_s28  ;;  %v831_v0 = vpop.f32.mrb[9].mxu0 }
 0x525   : > { %v547_v38 = vpop.f32.mrb[10].mxu0 }
 0x526   : > { %v832_v39 = vpop.f32.mrb[11].mxu0 }
 0x54f   : > { %v656_v40 = vpop.f32.mrb[12].mxu0 }
 0x550   : > { %671 = vrot.lane.b32.xlu0 %v656_v40, %s895_s29  ;;  %v843_v41 = vpop.f32.mrb[13].mxu0 }
 0x551   : > { %v659_v42 = vpop.f32.mrb[14].mxu0 }
 0x552   : > { %v844_v43 = vpop.f32.mrb[15].mxu0 }
 0x58e   : > { %v664_v44 = vpop.permute.xlu0 %663 }
 0x58f   : > { %v674_v46 = vsel %vm209_vm1, %v986_v36, %v664_v44 }
 0x596   : > { %v668_v45 = vpop.permute.xlu1 %667 }
 0x597   : > { %v676_v47 = vsel %vm675_vm4, %v674_v46, %v668_v45 }
 0x5c2   : > { %v672_v48 = vpop.permute.xlu0 %671 }
 0x5c3   : > { %v678_v49 = vsel %vm677_vm5, %v676_v47, %v672_v48 }
 0x5c4   : > { %v679_v50 = vpack.c.bf16 %v678_v49, %v678_v49 }
 0x5c6   : > { %681 = vst.msk [vmem:[%s199_s5] sm:$0xf] %vm680_vm6, %v679_v50 }
 0x5c7 PF: > { %s13_s12 = sadd.s32 1, %s886_s12  }
 0x5c8   : > { %p10_p4 = scmp.ge.s32.totalorder %s13_s12, 4  }
 0x5ca   :  { %12 = sbr.rel (!%p10_p4) target bundleno = 1 (0x1), region = 68 }

// kernel: closed_call.30
= control target key start
LH: loop header
LB: loop body
LE: loop exit
PB: predicated region body
PF: predicated region fallthrough
CT: control target
= control target key end

     0   :  { %s907_s12 = smov 0   ;;  %s1002_s0 = inlined_call_operand.vmem [shape: bf16[2,8,32], index: 0, kind: input, shape index: {}]   ;;  %s1003_s1 = inlined_call_operand.vmem [shape: bf16[2,8,32], index: 1, kind: input, shape index: {}]   ;;  %s1004_s2 = inlined_call_operand.vmem [shape: bf16[2,8,32], index: 2, kind: input, shape index: {}]   ;;  %s1005_s3 = inlined_call_operand.vmem [shape: bf16[2,8,32], index: 3, kind: output, shape index: {}]  }
   0x1 LB: > { %s750_s13 = sadd.s32 4294967295, %s877_s12   ;;  %p754_p0 = scmp.ge.s32.totalorder %s877_s12, 1  ;;  %s877_s12 = sphi %s907_s12, %s13_s12  }
   0x2   : > { %p154_p1 = scmp.lt.s32.totalorder %s877_s12, 3 }
   0x4   : > { %p155_p2 = pnand %p754_p0, %p154_p1 }
   0x5   : > { %p184_p3 = scmp.lt.s32.totalorder (!%p155_p2), %s750_s13, 1  ;;  %v879_v0 = vmov (!%p155_p2), 0.0   ;;  %vm880_vm0 = vmmov (!%p155_p2), 0   ;;  %vm204_vm1 = vcmask (!%p155_p2), 64512   ;;  %s881_s21 = smov (!%p155_p2), 120   ;;  %vm267_vm2 = vcmask (!%p155_p2), 1043456  }
   0x6   : > { %158 = sbr.rel (%p155_p2) target bundleno = 1477 (0x5c5), region = 32  ;;  %788 = vmatprep.subr.bf16.mxu0 (!%p155_p2), %v879_v0  ;;  %790 = vmatprep.mubr.msk.bf16.mxu0 (!%p155_p2), %vm880_vm0, %v879_v0  ;;  %s882_s22 = smov (!%p155_p2), 112   ;;  %vm666_vm3 = vcmask (!%p155_p2), 130048   ;;  %vm668_vm4 = vcmask (!%p155_p2), 195584   ;;  %vm671_vm5 = vcmask (!%p155_p2), 257024  }
   0x7   : > { %794 = vmatprep.subr.bf16.mxu1 (!%p155_p2), %v879_v0  ;;  %796 = vmatprep.mubr.msk.bf16.mxu1 (!%p155_p2), %vm880_vm0, %v879_v0  ;;  %s883_s23 = smov (!%p155_p2), 104   ;;  %s884_s27 = smov (!%p155_p2), 8  }
   0x8   : > { %s885_s28 = smov (!%p155_p2), 16   ;;  %s886_s29 = smov (!%p155_p2), 24  }
   0xd   : > { %s1007_s13 = smov (!%p184_p3, %s750_s13), 1 }
   0xe   : > { %s921_s14 = sshll.u32 %s1007_s13, 2 }
   0xf   : > { %s191_s17 = scalar_lea.vmem %s1003_s1, %s921_s14  ;;  %s187_s20 = scalar_lea.vmem %s1002_s0, %s921_s14 }
  0x10   : > { %v202_v1 = vld [vmem:[%s191_s17] sm:$0xf]  ;;  %s195_s26 = scalar_lea.vmem %s1004_s2, %s921_s14  ;;  %s199_s5 = scalar_lea.vmem %s1005_s3, %s921_s14 }
  0x11   : > { %v209_v2 = vsel %vm204_vm1, %v202_v1, 0  ;;  %v201_v3 = vld [vmem:[%s187_s20] sm:$0xf]  ;;  %v762_v10 = vcombine.low %v202_v1, %v202_v1 }
  0x12   : > { %789 = vmatpush3.bf16.xpose.msra.mxu0 %v209_v2  ;;  %v761_v11 = vcombine.low %v201_v3, %v201_v3  ;;  %v947_v17 = vld [vmem:[%s195_s26] sm:$0xf] }
  0x13   : > { %806 = vmatprep.subr.bf16.mxu0 %v879_v0  ;;  %319 = vrot.lane.b32.xlu1 %v762_v10, %s881_s21  ;;  %v269_v18 = vsel %vm267_vm2, %v947_v17, 0  ;;  %v764_v1 = vcombine.low %v947_v17, %v947_v17 }
  0x14   : > { %795 = vmatpush3.bf16.msra.mxu1 %v269_v18 }
  0x15   : > { %800 = vmatprep.subr.bf16.mxu1 %v879_v0 }
  0x17   : > { %314 = vrot.lane.b32.xlu1 %v761_v11, %s881_s21 }
  0x19   : > { %791 = vmatmul.mubr.msk.bf16.vlgmr.msra.gmra.mrb[0].mxu0 %vm204_vm1, %v201_v3 }
  0x1a   : > { %808 = vmatprep.mubr.msk.bf16.mxu0 %vm880_vm0, %v879_v0 }
  0x1b   : > { %431 = vrot.lane.b32.xlu1 %v761_v11, %s882_s22 }
  0x1f   : > { %544 = vrot.lane.b32.xlu1 %v762_v10, %s883_s23 }
  0x23   : > { %542 = vrot.lane.b32.xlu1 %v761_v11, %s883_s23 }
  0x85   : > { %v320_v21 = vpop.permute.xlu1 %319 }
  0x86   : > { %v325_v23 = vsel %vm204_vm1, %v320_v21, 0 }
  0x89   : > { %v315_v25 = vpop.permute.xlu1 %314 }
  0x8d   : > { %v432_v27 = vpop.permute.xlu1 %431 }
  0x91   : > { %v545_v29 = vpop.permute.xlu1 %544 }
  0x92   : > { %v550_v30 = vsel %vm204_vm1, %v545_v29, 0 }
  0x95   : > { %v543_v31 = vpop.permute.xlu1 %542 }
  0xec   : > { %v245_v4 = vpop.f32.mrb[0].mxu0 }
  0xed   : > { %v251_v5 = vmul.f32 0.35355338, %v245_v4  ;;  %v792_v6 = vpop.f32.mrb[1].mxu0 }
  0xee   : > { %v248_v7 = vpop.f32.mrb[2].mxu0 }
  0xef   : > { %v793_v8 = vpop.f32.mrb[3].mxu0  ;;  %v252_v9 = vsel %vm204_vm1, %v251_v5, -inf }
  0xf0   : > { %253 = vmax.xlane.f32.xlu0 %v252_v9 }
 0x17d   : > { %v254_v12 = vpop.xlane.xlu0 %253 }
 0x17e   : > { %v255_v13 = vsub.f32 %v251_v5, %v254_v12 }
 0x180   : > { %v256_v14 = vmul.f32 1.442695, %v255_v13 }
 0x182   : > { %855 = vpow2.f32 %v256_v14 }
 0x18c   : > { %v856_v15 = vpop.eup %855 }
 0x18d   : > { %v258_v16 = vsel %vm204_vm1, %v856_v15, 0.0 }
 0x18e   : > { %259 = vadd.xlane.f32.xlu0 %v258_v16 }
 0x1a4   : > { %433 = vrot.lane.b32.xlu0 %v762_v10, %s882_s22 }
 0x21b   : > { %v260_v19 = vpop.xlane.xlu0 %259 }
 0x21c   : > { %857 = vrcp.f32 %v260_v19 }
 0x21f   : > { %v434_v26 = vpop.permute.xlu0 %433 }
 0x220   : > { %v439_v28 = vsel %vm204_vm1, %v434_v26, 0 }
 0x226   : > { %v858_v20 = vpop.eup %857 }
 0x227   : > { %v262_v22 = vmul.f32 %v858_v20, %v856_v15 }
 0x229   : > { %v263_v24 = vpack.c.bf16 %v262_v22, %v262_v22 }
 0x22b   : > { %797 = vmatmul.mubr.msk.bf16.vlgmr.msra.gmra.mrb[0].mxu1 %vm204_vm1, %v263_v24 }
 0x22c   : > { %801 = vmatpush3.bf16.xpose.msra.mxu1 %v325_v23  ;;  %802 = vmatprep.mubr.msk.bf16.mxu1 %vm880_vm0, %v879_v0 }
 0x22d   : > { %812 = vmatprep.subr.bf16.mxu1 %v879_v0 }
 0x233   : > { %803 = vmatmul.mubr.msk.bf16.vlgmr.msra.gmra.mrb[4].mxu1 %vm204_vm1, %v315_v25 }
 0x234   : > { %813 = vmatpush3.bf16.xpose.msra.mxu1 %v439_v28  ;;  %814 = vmatprep.mubr.msk.bf16.mxu1 %vm880_vm0, %v879_v0 }
 0x235   : > { %824 = vmatprep.subr.bf16.mxu1 %v879_v0 }
 0x23b   : > { %815 = vmatmul.mubr.msk.bf16.vlgmr.msra.gmra.mrb[8].mxu1 %vm204_vm1, %v432_v27 }
 0x23c   : > { %825 = vmatpush3.bf16.xpose.msra.mxu1 %v550_v30  ;;  %826 = vmatprep.mubr.msk.bf16.mxu1 %vm880_vm0, %v879_v0 }
 0x243   : > { %827 = vmatmul.mubr.msk.bf16.vlgmr.msra.gmra.mrb[12].mxu1 %vm204_vm1, %v543_v31 }
 0x2fe   : > { %v968_v32 = vpop.f32.mrb[0].mxu1 }
 0x2ff   : > { %v798_v33 = vpop.f32.mrb[1].mxu1 }
 0x300   : > { %v308_v34 = vpop.f32.mrb[2].mxu1 }
 0x301   : > { %v799_v35 = vpop.f32.mrb[3].mxu1 }
 0x306   : > { %v361_v36 = vpop.f32.mrb[4].mxu1 }
 0x307   : > { %v367_v37 = vmul.f32 0.35355338, %v361_v36  ;;  %v804_v38 = vpop.f32.mrb[5].mxu1 }
 0x308   : > { %v364_v39 = vpop.f32.mrb[6].mxu1 }
 0x309   : > { %v805_v40 = vpop.f32.mrb[7].mxu1  ;;  %v368_v41 = vsel %vm204_vm1, %v367_v37, -inf }
 0x30a   : > { %369 = vmax.xlane.f32.xlu1 %v368_v41 }
 0x30e   : > { %v475_v42 = vpop.f32.mrb[8].mxu1 }
 0x30f   : > { %v481_v43 = vmul.f32 0.35355338, %v475_v42  ;;  %v816_v44 = vpop.f32.mrb[9].mxu1 }
 0x310   : > { %v478_v45 = vpop.f32.mrb[10].mxu1 }
 0x311   : > { %v482_v46 = vsel %vm204_vm1, %v481_v43, -inf  ;;  %v817_v47 = vpop.f32.mrb[11].mxu1 }
 0x312   : > { %483 = vmax.xlane.f32.xlu0 %v482_v46 }
 0x316   : > { %v586_v48 = vpop.f32.mrb[12].mxu1 }
 0x317   : > { %v592_v49 = vmul.f32 0.35355338, %v586_v48  ;;  %v828_v50 = vpop.f32.mrb[13].mxu1 }
 0x318   : > { %v589_v51 = vpop.f32.mrb[14].mxu1 }
 0x319   : > { %v593_v52 = vsel %vm204_vm1, %v592_v49, -inf  ;;  %v829_v53 = vpop.f32.mrb[15].mxu1 }
 0x31a   : > { %594 = vmax.xlane.f32.xlu1 %v593_v52 }
 0x397   : > { %v370_v54 = vpop.xlane.xlu1 %369 }
 0x398   : > { %v371_v55 = vsub.f32 %v367_v37, %v370_v54 }
 0x39a   : > { %v372_v56 = vmul.f32 1.442695, %v371_v55 }
 0x39c   : > { %859 = vpow2.f32 %v372_v56 }
 0x39f   : > { %v484_v57 = vpop.xlane.xlu0 %483 }
 0x3a0   : > { %v485_v58 = vsub.f32 %v481_v43, %v484_v57 }
 0x3a2   : > { %v486_v59 = vmul.f32 1.442695, %v485_v58 }
 0x3a4   : > { %861 = vpow2.f32 %v486_v59 }
 0x3a6   : > { %v860_v60 = vpop.eup %859 }
 0x3a7   : > { %v374_v61 = vsel %vm204_vm1, %v860_v60, 0.0  ;;  %v595_v2 = vpop.xlane.xlu1 %594 }
 0x3a8   : > { %375 = vadd.xlane.f32.xlu1 %v374_v61  ;;  %v596_v3 = vsub.f32 %v592_v49, %v595_v2 }
 0x3aa   : > { %v597_v4 = vmul.f32 1.442695, %v596_v3 }
 0x3ac   : > { %863 = vpow2.f32 %v597_v4 }
 0x3ae   : > { %v862_v62 = vpop.eup %861 }
 0x3af   : > { %v488_v63 = vsel %vm204_vm1, %v862_v62, 0.0 }
 0x3b0   : > { %489 = vadd.xlane.f32.xlu0 %v488_v63 }
 0x3b6   : > { %v864_v5 = vpop.eup %863 }
 0x3b7   : > { %v599_v6 = vsel %vm204_vm1, %v864_v5, 0.0 }
 0x3b9   : > { %494 = vrot.lane.b32.xlu1 %v764_v1, %s882_s22 }
 0x3c6   : > { %383 = vrot.lane.b32.xlu0 %v764_v1, %s881_s21 }
 0x3dd   : > { %600 = vadd.xlane.f32.xlu1 %v599_v6 }
 0x3ee   : > { %605 = vrot.lane.b32.xlu1 %v764_v1, %s883_s23 }
 0x435   : > { %v376_v7 = vpop.xlane.xlu1 %375 }
 0x436   : > { %865 = vrcp.f32 %v376_v7 }
 0x439   : > { %v495_v13 = vpop.permute.xlu1 %494 }
 0x43a   : > { %v500_v15 = vsel %vm267_vm2, %v495_v13, 0 }
 0x43d   : > { %v490_v8 = vpop.xlane.xlu0 %489 }
 0x43e   : > { %867 = vrcp.f32 %v490_v8 }
 0x440   : > { %v866_v9 = vpop.eup %865 }
 0x441   : > { %v378_v10 = vmul.f32 %v866_v9, %v860_v60  ;;  %v384_v11 = vpop.permute.xlu0 %383 }
 0x442   : > { %v389_v12 = vsel %vm267_vm2, %v384_v11, 0 }
 0x443   : > { %807 = vmatpush3.bf16.msra.mxu0 %v389_v12  ;;  %v379_v14 = vpack.c.bf16 %v378_v10, %v378_v10 }
 0x444   : > { %818 = vmatprep.subr.bf16.mxu0 %v879_v0 }
 0x446   : > { %809 = vmatmul.mubr.msk.bf16.vlgmr.msra.gmra.mrb[4].mxu0 %vm204_vm1, %v379_v14 }
 0x447   : > { %819 = vmatpush3.bf16.msra.mxu0 %v500_v15  ;;  %820 = vmatprep.mubr.msk.bf16.mxu0 %vm880_vm0, %v879_v0 }
 0x448   : > { %v868_v16 = vpop.eup %867  ;;  %830 = vmatprep.subr.bf16.mxu0 %v879_v0 }
 0x449   : > { %v492_v17 = vmul.f32 %v868_v16, %v862_v62 }
 0x44b   : > { %v493_v18 = vpack.c.bf16 %v492_v17, %v492_v17 }
 0x44e   : > { %821 = vmatmul.mubr.msk.bf16.vlgmr.msra.gmra.mrb[8].mxu0 %vm204_vm1, %v493_v18 }
 0x44f   : > { %832 = vmatprep.mubr.msk.bf16.mxu0 %vm880_vm0, %v879_v0 }
 0x46a   : > { %v601_v19 = vpop.xlane.xlu1 %600 }
 0x46b   : > { %869 = vrcp.f32 %v601_v19 }
 0x46e   : > { %v606_v20 = vpop.permute.xlu1 %605 }
 0x46f   : > { %v611_v21 = vsel %vm267_vm2, %v606_v20, 0 }
 0x470   : > { %831 = vmatpush3.bf16.msra.mxu0 %v611_v21 }
 0x475   : > { %v870_v22 = vpop.eup %869 }
 0x476   : > { %v603_v23 = vmul.f32 %v870_v22, %v864_v5 }
 0x478   : > { %v604_v24 = vpack.c.bf16 %v603_v23, %v603_v23 }
 0x47a   : > { %833 = vmatmul.mubr.msk.bf16.vlgmr.msra.gmra.mrb[12].mxu0 %vm204_vm1, %v604_v24 }
 0x519   : > { %v425_v25 = vpop.f32.mrb[4].mxu0 }
 0x51a   : > { %654 = vrot.lane.b32.xlu0 %v425_v25, %s884_s27  ;;  %v810_v26 = vpop.f32.mrb[5].mxu0 }
 0x51b   : > { %v428_v27 = vpop.f32.mrb[6].mxu0 }
 0x51c   : > { %v811_v28 = vpop.f32.mrb[7].mxu0 }
 0x521   : > { %v536_v29 = vpop.f32.mrb[8].mxu0 }
 0x522   : > { %658 = vrot.lane.b32.xlu1 %v536_v29, %s885_s28  ;;  %v822_v0 = vpop.f32.mrb[9].mxu0 }
 0x523   : > { %v539_v30 = vpop.f32.mrb[10].mxu0 }
 0x524   : > { %v823_v31 = vpop.f32.mrb[11].mxu0 }
 0x54d   : > { %v647_v33 = vpop.f32.mrb[12].mxu0 }
 0x54e   : > { %662 = vrot.lane.b32.xlu0 %v647_v33, %s886_s29  ;;  %v834_v34 = vpop.f32.mrb[13].mxu0 }
 0x54f   : > { %v650_v35 = vpop.f32.mrb[14].mxu0 }
 0x550   : > { %v835_v36 = vpop.f32.mrb[15].mxu0 }
 0x58c   : > { %v655_v37 = vpop.permute.xlu0 %654 }
 0x58d   : > { %v665_v39 = vsel %vm204_vm1, %v968_v32, %v655_v37 }
 0x594   : > { %v659_v38 = vpop.permute.xlu1 %658 }
 0x595   : > { %v667_v40 = vsel %vm666_vm3, %v665_v39, %v659_v38 }
 0x5c0   : > { %v663_v41 = vpop.permute.xlu0 %662 }
 0x5c1   : > { %v669_v42 = vsel %vm668_vm4, %v667_v40, %v663_v41 }
 0x5c2   : > { %v670_v43 = vpack.c.bf16 %v669_v42, %v669_v42 }
 0x5c4   : > { %672 = vst.msk [vmem:[%s199_s5] sm:$0xf] %vm671_vm5, %v670_v43 }
 0x5c5 PF: > { %s13_s12 = sadd.s32 1, %s877_s12  }
 0x5c6   : > { %p10_p4 = scmp.ge.s32.totalorder %s13_s12, 4  }
 0x5c8   :  { %12 = sbr.rel (!%p10_p4) target bundleno = 1 (0x1), region = 68 }

// kernel: closed_call.29
= control target key start
LH: loop header
LB: loop body
LE: loop exit
PB: predicated region body
PF: predicated region fallthrough
CT: control target
= control target key end

     0   :  { %vm19_vm0 = vcmask 523264   ;;  %v149_v0 = vmov 0.0   ;;  %vm150_vm1 = vmmov 0   ;;  %vm47_vm2 = vcmask 261120   ;;  %s193_s1 = inlined_call_operand.vmem [shape: bf16[32,64], index: 1, kind: input, shape index: {}]   ;;  %s194_s0 = inlined_call_operand.vmem [shape: bf16[16,32], index: 0, kind: input, shape index: {}]   ;;  %s195_s2 = inlined_call_operand.vmem [shape: bf16[1,64], index: 2, kind: input, shape index: {}]   ;;  %s196_s3 = inlined_call_operand.vmem [shape: bf16[16,64], index: 3, kind: output, shape index: {}]  }
   0x1   :  { %136 = vmatprep.subr.bf16.mxu0 %v149_v0  ;;  %v146_v1 = vld [vmem:[%s193_s1] sm:$0xff]   ;;  %140 = vmatprep.mubr.msk.bf16.mxu0 %vm150_vm1, %v149_v0  ;;  %20 = vst.msk [vmem:[#allocation2] sm:$0xff] %vm19_vm0, %v149_v0  ;;  %21 = vst.msk [vmem:[#allocation2 + $0x8] sm:$0xff] %vm19_vm0, %v149_v0  ;;  %v147_v2 = vld [vmem:[%s193_s1 + $0x8] sm:$0xff]   ;;  %v104_v4 = vlaneseq  ;;  %vm118_vm3 = vcmask 519168  }
   0x2   :  { %137 = vmatpush3.bf16.msra.mxu0 %v146_v1  ;;  %v148_v3 = vld [vmem:[%s194_s0] sm:$0xff]  }
   0x3   :  { %138 = vmatprep.subr.bf16.mxu0 %v149_v0  ;;  %v105_v6 = vshrl.u32 %v104_v4, 7  ;;  %v102_v8 = vld [vmem:[%s195_s2] sm:$0x1] }
   0x4   :  { %v103_v13 = vunpack.c.l.bf16 %v102_v8 }
   0x5   :  { %v106_v14 = vsub.s32 0, %v105_v6 }
   0x6   :  { %139 = vmatpush3.bf16.msra.mxu0 %v147_v2 }
   0x7   :  { %v107_v17 = vrot.slane %v103_v13, %v106_v14 }
   0x8   :  { %v22_v5 = vld [vmem:[#allocation2] sm:$0xff]  ;;  %v23_v9 = vld [vmem:[#allocation2 + $0x8] sm:$0xff] }
   0x9   :  { %141 = vmatmul.mubr.msk.bf16.vlgmr.msra.gmra.mrb[0].mxu0 %vm47_vm2, %v148_v3 }
  0xdc   :  { %v85_v7 = vpop.f32.mrb[0].mxu0 }
  0xdd   :  { %v92_v10 = vadd.f32 %v85_v7, %v22_v5  ;;  %v142_v11 = vpop.f32.mrb[1].mxu0 }
  0xde   :  { %v88_v12 = vpop.f32.mrb[2].mxu0 }
  0xdf   :  { %95 = vst.msk [vmem:[#allocation2] sm:$0xff] %vm19_vm0, %v92_v10  ;;  %v93_v15 = vadd.f32 %v88_v12, %v23_v9  ;;  %v143_v16 = vpop.f32.mrb[3].mxu0 }
  0xe1   :  { %96 = vst.msk [vmem:[#allocation2 + $0x8] sm:$0xff] %vm19_vm0, %v93_v15 }
  0xe6   :  { %v100_v18 = vld [vmem:[#allocation2] sm:$0xff] }
  0xe7   :  { %v108_v19 = vadd.f32 %v107_v17, %v100_v18 }
  0xe8   :  { %v101_v20 = vld [vmem:[#allocation2 + $0x8] sm:$0xff] }
  0xe9   :  { %v131_v21 = vpack.c.bf16 %v108_v19, %v108_v19  ;;  %v109_v22 = vadd.f32 %v107_v17, %v101_v20 }
  0xeb   :  { %119 = vst.msk [vmem:[%s196_s3] sm:$0xf] %vm118_vm3, %v131_v21  ;;  %v132_v23 = vpack.c.bf16 %v109_v22, %v109_v22 }
  0xed   :  { %120 = vst.msk [vmem:[%s196_s3 + $0x4] sm:$0xf] %vm118_vm3, %v132_v23 }

// kernel: closed_call.32
= control target key start
LH: loop header
LB: loop body
LE: loop exit
PB: predicated region body
PF: predicated region fallthrough
CT: control target
= control target key end

     0   :  { %vm31_vm0 = vcmask 261120   ;;  %v329_v0 = vmov 0.0   ;;  %vm330_vm1 = vmmov 0   ;;  %v42_v8 = vlaneseq  ;;  %s428_s1 = inlined_call_operand.vmem [shape: bf16[32,64], index: 1, kind: input, shape index: {}]   ;;  %s429_s3 = inlined_call_operand.vmem [shape: bf16[64,32], index: 3, kind: input, shape index: {}]   ;;  %s430_s0 = inlined_call_operand.vmem [shape: bf16[16,32], index: 0, kind: input, shape index: {}]   ;;  %s431_s2 = inlined_call_operand.vmem [shape: bf16[1,64], index: 2, kind: input, shape index: {}]   ;;  %s432_s4 = inlined_call_operand.vmem [shape: bf16[1,32], index: 4, kind: input, shape index: {}]   ;;  %s433_s5 = inlined_call_operand.vmem [shape: bf16[1,32], index: 5, kind: input, shape index: {}]   ;;  %s434_s6 = inlined_call_operand.vmem [shape: bf16[1,32], index: 6, kind: input, shape index: {}]   ;;  %s435_s7 = inlined_call_operand.vmem [shape: bf16[16,32], index: 7, kind: output, shape index: {}]  }
   0x1   :  { %296 = vmatprep.subr.bf16.mxu0 %v329_v0  ;;  %v318_v1 = vld [vmem:[%s428_s1] sm:$0xff]   ;;  %300 = vmatprep.mubr.msk.bf16.mxu0 %vm330_vm1, %v329_v0  ;;  %32 = vst.msk [vmem:[#allocation2] sm:$0xff] %vm31_vm0, %v329_v0  ;;  %33 = vst.msk [vmem:[#allocation2 + $0x8] sm:$0xff] %vm31_vm0, %v329_v0  ;;  %v319_v2 = vld [vmem:[%s428_s1 + $0x8] sm:$0xff]   ;;  %vm145_vm2 = vcmask 523264   ;;  %vm264_vm3 = vcmask 257024  }
   0x2   :  { %304 = vmatprep.subr.bf16.mxu1 %v329_v0  ;;  %312 = vmatprep.mubr.msk.bf16.mxu1 %vm330_vm1, %v329_v0  ;;  %v321_v3 = vld [vmem:[%s429_s3] sm:$0xff]   ;;  %v322_v5 = vld [vmem:[%s429_s3 + $0x8] sm:$0xff]   ;;  %v323_v6 = vld [vmem:[%s429_s3 + $0x10] sm:$0xff]   ;;  %v43_v9 = vshrl.u32 %v42_v8, 7 }
   0x3   :  { %297 = vmatpush3.bf16.msra.mxu0 %v318_v1  ;;  %v320_v4 = vld [vmem:[%s430_s0] sm:$0xff]   ;;  %305 = vmatpush3.bf16.msra.mxu1 %v321_v3  ;;  %v324_v7 = vld [vmem:[%s429_s3 + $0x18] sm:$0xff]  }
   0x4   :  { %298 = vmatprep.subr.bf16.mxu0 %v329_v0  ;;  %306 = vmatprep.subr.bf16.mxu1 %v329_v0  ;;  %v40_v10 = vld [vmem:[%s431_s2] sm:$0x1]  ;;  %v398_v12 = vsub.s32 0, %v43_v9 }
   0x5   :  { %v41_v11 = vunpack.c.l.bf16 %v40_v10  ;;  %v199_v26 = vld [vmem:[%s432_s4] sm:$0x1] }
   0x6   :  { %v200_v32 = vunpack.c.l.bf16 %v199_v26  ;;  %v285_v33 = vld [vmem:[%s430_s0] sm:$0xff]  }
   0x7   :  { %299 = vmatpush3.bf16.msra.mxu0 %v319_v2  ;;  %307 = vmatpush3.bf16.msra.mxu1 %v322_v5  ;;  %v45_v13 = vrot.slane %v41_v11, %v398_v12  ;;  %v286_v35 = vunpack.c.l.bf16 %v285_v33  ;;  %v287_v38 = vunpack.c.h.bf16 %v285_v33  ;;  %v240_v60 = vld [vmem:[%s433_s5] sm:$0x1] }
   0x8   :  { %308 = vmatprep.subr.bf16.mxu1 %v329_v0  ;;  %v110_v23 = vld [vmem:[#allocation2] sm:$0xff]  ;;  %v111_v25 = vld [vmem:[#allocation2 + $0x8] sm:$0xff]  ;;  %v204_v34 = vrot.slane %v200_v32, %v398_v12  ;;  %v241_v63 = vunpack.c.l.bf16 %v240_v60 }
   0x9   :  { %v248_v62 = vld [vmem:[%s434_s6] sm:$0x1] }
   0xa   :  { %301 = vmatmul.mubr.msk.bf16.vlgmr.msra.gmra.mrb[0].mxu0 %vm31_vm0, %v320_v4  ;;  %v245_v1 = vrot.slane %v241_v63, %v398_v12 }
   0xb   :  { %309 = vmatpush3.bf16.msra.mxu1 %v323_v6 }
   0xc   :  { %310 = vmatprep.subr.bf16.mxu1 %v329_v0  ;;  %v249_v0 = vunpack.c.l.bf16 %v248_v62 }
   0xe   :  { %v253_v3 = vrot.slane %v249_v0, %v398_v12 }
   0xf   :  { %311 = vmatpush3.bf16.msra.mxu1 %v324_v7 }
  0xdd   :  { %v101_v14 = vpop.f32.mrb[0].mxu0 }
  0xde   :  { %v102_v15 = vadd.f32 %v101_v14, %v45_v13  ;;  %v302_v16 = vpop.f32.mrb[1].mxu0 }
  0xdf   :  { %v104_v17 = vpop.f32.mrb[2].mxu0 }
  0xe0   :  { %v105_v18 = vadd.f32 %v104_v17, %v45_v13  ;;  %v303_v19 = vpop.f32.mrb[3].mxu0  ;;  %v108_v20 = vmax.f32 %v102_v15, 0.0 }
  0xe2   :  { %v109_v21 = vmax.f32 %v105_v18, 0.0 }
  0xe4   :  { %v112_v22 = vpack.c.bf16 %v109_v21, %v108_v20 }
  0xe6   :  { %313 = vmatmul.mubr.msk.bf16.vlgmr.msra.gmra.mrb[0].mxu1 %vm145_vm2, %v112_v22 }
 0x1b9   :  { %v183_v24 = vpop.f32.mrb[0].mxu1 }
 0x1ba   :  { %v190_v27 = vadd.f32 %v183_v24, %v110_v23  ;;  %v314_v28 = vpop.f32.mrb[1].mxu1 }
 0x1bb   :  { %v186_v29 = vpop.f32.mrb[2].mxu1 }
 0x1bc   :  { %192 = vst.msk [vmem:[#allocation2] sm:$0xff] %vm31_vm0, %v190_v27  ;;  %v191_v30 = vadd.f32 %v186_v29, %v111_v25  ;;  %v315_v31 = vpop.f32.mrb[3].mxu1 }
 0x1be   :  { %193 = vst.msk [vmem:[#allocation2 + $0x8] sm:$0xff] %vm31_vm0, %v191_v30 }
 0x1c3   :  { %v197_v36 = vld [vmem:[#allocation2] sm:$0xff] }
 0x1c4   :  { %v205_v37 = vadd.f32 %v204_v34, %v197_v36 }
 0x1c5   :  { %v198_v39 = vld [vmem:[#allocation2 + $0x8] sm:$0xff] }
 0x1c6   :  { %v211_v40 = vadd.f32 %v286_v35, %v205_v37  ;;  %v206_v41 = vadd.f32 %v204_v34, %v198_v39 }
 0x1c8   :  { %v213_v42 = vsel %vm31_vm0, %v211_v40, 0.0  ;;  %v212_v43 = vadd.f32 %v287_v38, %v206_v41 }
 0x1c9   :  { %214 = vadd.xlane.f32.xlu0 %v213_v42 }
 0x1ca   :  { %v216_v44 = vsel %vm31_vm0, %v212_v43, 0.0 }
 0x1cd   :  { %217 = vadd.xlane.f32.xlu0 %v216_v44 }
 0x256   :  { %v215_v45 = vpop.xlane.xlu0 %214 }
 0x257   :  { %v220_v46 = vmul.f32 0.03125, %v215_v45 }
 0x259   :  { %v222_v47 = vsub.f32 %v211_v40, %v220_v46 }
 0x25a   :  { %v218_v48 = vpop.xlane.xlu0 %217 }
 0x25b   :  { %v221_v49 = vmul.f32 0.03125, %v218_v48  ;;  %v224_v50 = vmul.f32 %v222_v47, %v222_v47 }
 0x25d   :  { %v223_v51 = vsub.f32 %v212_v43, %v221_v49  ;;  %v226_v52 = vsel %vm31_vm0, %v224_v50, 0.0 }
 0x25e   :  { %227 = vadd.xlane.f32.xlu1 %v226_v52 }
 0x25f   :  { %v225_v53 = vmul.f32 %v223_v51, %v223_v51 }
 0x261   :  { %v229_v54 = vsel %vm31_vm0, %v225_v53, 0.0 }
 0x262   :  { %230 = vadd.xlane.f32.xlu1 %v229_v54 }
 0x2eb   :  { %v228_v55 = vpop.xlane.xlu1 %227 }
 0x2ec   :  { %v232_v56 = vmul.f32 0.03125, %v228_v55 }
 0x2ee   :  { %v234_v57 = vadd.f32 1e-05, %v232_v56 }
 0x2ef   :  { %v231_v58 = vpop.xlane.xlu1 %230 }
 0x2f0   :  { %325 = vrsqrt.f32 %v234_v57  ;;  %v233_v59 = vmul.f32 0.03125, %v231_v58 }
 0x2f2   :  { %v235_v61 = vadd.f32 1e-05, %v233_v59 }
 0x2f4   :  { %327 = vrsqrt.f32 %v235_v61 }
 0x2fa   :  { %v326_v2 = vpop.eup %325 }
 0x2fb   :  { %v238_v4 = vmul.f32 %v326_v2, %v222_v47 }
 0x2fd   :  { %v246_v5 = vmul.f32 %v245_v1, %v238_v4 }
 0x2fe   :  { %v328_v6 = vpop.eup %327 }
 0x2ff   :  { %v254_v7 = vadd.f32 %v253_v3, %v246_v5  ;;  %v239_v8 = vmul.f32 %v328_v6, %v223_v51 }
 0x301   :  { %v282_v9 = vpack.c.bf16 %v254_v7, %v254_v7  ;;  %v247_v10 = vmul.f32 %v245_v1, %v239_v8 }
 0x303   :  { %265 = vst.msk [vmem:[%s435_s7] sm:$0xf] %vm264_vm3, %v282_v9  ;;  %v255_v11 = vadd.f32 %v253_v3, %v247_v10 }
 0x305   :  { %v283_v13 = vpack.c.bf16 %v255_v11, %v255_v11 }
 0x307   :  { %266 = vst.msk [vmem:[%s435_s7 + $0x4] sm:$0xf] %vm264_vm3, %v283_v13 }

</bundles_post_ra>
